<compile_context>
chip_gen: v6e
topology: v6e:2x2x1
jax: 0.10.0
libtpu: 0.0.40
codegen_flags: <defaults>
</compile_context>

<pallas_src>
import numpy as np
import jax
import jax.numpy as jnp
from jax.experimental import pallas as pl
from jax.experimental.pallas import tpu as pltpu

WINDOW = 11
SIGMA = 1.5
PAD = WINDOW // 2
C1 = 0.01 ** 2
C2 = 0.03 ** 2


def _gaussian_kernel1d(window_size, sigma):
    # Matches torchvision.transforms.functional._get_gaussian_kernel1d
    half = (window_size - 1) * 0.5
    xs = np.linspace(-half, half, window_size)
    pdf = np.exp(-0.5 * (xs / sigma) ** 2)
    return (pdf / pdf.sum()).astype(np.float32)


G1D = _gaussian_kernel1d(WINDOW, SIGMA)  # compile-time constant


def _reflect_index(j, n):
    # PyTorch/np "reflect" padding (edge not repeated); valid for n > PAD.
    if j < 0:
        return -j
    if j >= n:
        return 2 * (n - 1) - j
    return j


def _band_matrix(n):
    """(n, n) matrix M with (M @ v)[i] = reflect-padded 11-tap Gaussian blur of v at i."""
    m = np.zeros((n, n), np.float32)
    for i in range(n):
        for k in range(WINDOW):
            j = _reflect_index(i + k - PAD, n)
            m[i, j] += G1D[k]
    return m


def _pick_bc(nc, h, w, vmem_budget=24 << 20, max_lanes=1024):
    """Largest divisor of nc whose per-step working set fits the VMEM budget."""
    best = 1
    for bc in range(1, nc + 1):
        if nc % bc:
            continue
        lanes = bc * w
        if lanes > max_lanes:  # keep the block-diagonal column matrix small
            continue
        slab = h * lanes * 4
        # 2 inputs x 2 pipeline buffers + ~20 live f32 temporaries in the body
        # + resident band matrices (conservatively counted double-buffered).
        est = 4 * slab + 20 * slab + 2 * (lanes * lanes * 4 + h * h * 4) + 2 * lanes * 4
        if est <= vmem_budget:
            best = bc
    return best


def ssim_partial_kernel(x_ref, y_ref, bh_ref, bwd_ref, out_ref):
    # x_ref/y_ref block: (1, H, Bc*W) lane-dense slab of Bc planes
    # bh_ref: (H, H) row band matrix (reflect folded in)
    # bwd_ref: (Bc*W, Bc*W) block-diagonal column band matrix (reflect folded in)
    x = x_ref[0].astype(jnp.float32)   # (H, Bc*W)
    y = y_ref[0].astype(jnp.float32)
    bh = bh_ref[...]
    bwd = bwd_ref[...]

    def blur(p):
        # Row (H) blur then per-plane column (W) blur, both on the MXU.
        t = jnp.dot(bh, p, preferred_element_type=jnp.float32,
                    precision=jax.lax.Precision.HIGHEST)
        return jnp.dot(t, bwd, preferred_element_type=jnp.float32,
                       precision=jax.lax.Precision.HIGHEST)

    mu_x = blur(x)
    mu_y = blur(y)
    e_xx = blur(x * x)
    e_yy = blur(y * y)
    e_xy = blur(x * y)

    sigma_x = jnp.maximum(e_xx - mu_x * mu_x, 1e-6)   # torch.clamp(min=1e-6)
    sigma_y = jnp.maximum(e_yy - mu_y * mu_y, 1e-6)
    sigma_xy = e_xy - mu_x * mu_y

    num = (2.0 * mu_x * mu_y + C1) * (2.0 * sigma_xy + C2)
    den = (mu_x * mu_x + mu_y * mu_y + C1) * (sigma_x + sigma_y + C2)
    ssim_map = num / den                               # (H, Bc*W), lane-dense

    # Lane-dense partial reduction (sublane sum only); final sum in wrapper.
    out_ref[0] = jnp.sum(ssim_map, axis=0, keepdims=True)


def ssim_loss(x, y):
    """x, y: (N, C, H, W). Returns scalar loss = 1 - mean(ssim_map)."""
    N, C, H, W = x.shape
    assert y.shape == x.shape
    assert H > PAD and W > PAD, "reflect padding requires spatial dims > window//2"
    NC = N * C

    if not jnp.issubdtype(x.dtype, jnp.floating):
        x = x.astype(jnp.float32)
    if not jnp.issubdtype(y.dtype, jnp.floating):
        y = y.astype(jnp.float32)

    Bc = _pick_bc(NC, H, W)
    G = NC // Bc
    BcW = Bc * W

    # Lane-dense slabs: Z[g, h, b*W + w] = plane_{g*Bc+b}[h, w]
    def to_slabs(a):
        return a.reshape(G, Bc, H, W).transpose(0, 2, 1, 3).reshape(G, H, BcW)

    xs = to_slabs(x)
    ys = to_slabs(y)

    bh = jnp.asarray(_band_matrix(H))                                    # (H, H)
    bwd = jnp.asarray(np.kron(np.eye(Bc, dtype=np.float32),
                              _band_matrix(W).T))                        # (BcW, BcW)

    partials = pl.pallas_call(
        ssim_partial_kernel,
        out_shape=jax.ShapeDtypeStruct((G, 1, BcW), jnp.float32),
        grid=(G,),
        in_specs=[
            pl.BlockSpec((1, H, BcW), lambda i: (i, 0, 0)),
            pl.BlockSpec((1, H, BcW), lambda i: (i, 0, 0)),
            pl.BlockSpec((H, H), lambda i: (0, 0)),        # resident across grid
            pl.BlockSpec((BcW, BcW), lambda i: (0, 0)),    # resident across grid
        ],
        out_specs=pl.BlockSpec((1, 1, BcW), lambda i: (i, 0, 0)),
        compiler_params=pltpu.CompilerParams(
            dimension_semantics=("parallel",),             # no serial accumulator
            vmem_limit_bytes=48 * 1024 * 1024,
        ),
    )(xs, ys, bh, bwd)

    mean_ssim = jnp.sum(partials, dtype=jnp.float32) / jnp.float32(N * C * H * W)
    return 1.0 - mean_ssim


def _ref_ssim_loss(x, y):
    """Pure-JAX reference (reflect pad + depthwise conv), for numerical validation."""
    g = jnp.asarray(G1D)
    k2d = jnp.outer(g, g)

    def blur(img):
        n, c, h, w = img.shape
        imgp = jnp.pad(img, ((0, 0), (0, 0), (PAD, PAD), (PAD, PAD)), mode="reflect")
        kern = jnp.broadcast_to(k2d, (c, 1, WINDOW, WINDOW)).astype(jnp.float32)
        return jax.lax.conv_general_dilated(
            imgp, kern, (1, 1), "VALID",
            dimension_numbers=("NCHW", "OIHW", "NCHW"),
            feature_group_count=c,
            precision=jax.lax.Precision.HIGHEST,
        )

    x = x.astype(jnp.float32)
    y = y.astype(jnp.float32)
    mu_x, mu_y = blur(x), blur(y)
    sigma_x = jnp.maximum(blur(x * x) - mu_x ** 2, 1e-6)
    sigma_y = jnp.maximum(blur(y * y) - mu_y ** 2, 1e-6)
    sigma_xy = blur(x * y) - mu_x * mu_y
    ssim_map = (2 * mu_x * mu_y + C1) * (2 * sigma_xy + C2) / (
        (mu_x ** 2 + mu_y ** 2 + C1) * (sigma_x + sigma_y + C2)
    )
    return 1.0 - ssim_map.mean()


if __name__ == "__main__":
    key = jax.random.PRNGKey(0)
    kx, ky = jax.random.split(key)
    N, C, H, W = 2, 4, 16, 16
    x = jax.random.uniform(kx, (N, C, H, W), jnp.float32)
    y = jax.random.uniform(ky, (N, C, H, W), jnp.float32)

    loss = jax.block_until_ready(ssim_loss(x, y))
    ref = jax.block_until_ready(_ref_ssim_loss(x, y))
    # Tolerance accommodates MXU fp32 contraction (multi-pass) vs the conv
    # reference's rounding; any structural bug would be orders of magnitude off.
    assert np.allclose(np.asarray(loss), np.asarray(ref), rtol=1e-3, atol=1e-4), (loss, ref)
    print("KERNEL_OK")
</pallas_src>

<mosaic_0001>
module attributes {stable_mosaic.version = 11 : i64} {
  func.func @ssim_partial_kernel(%arg0: i32, %arg1: memref<1x16x128xf32, #tpu.memory_space<vmem>>, %arg2: memref<1x16x128xf32, #tpu.memory_space<vmem>>, %arg3: memref<16x16xf32, #tpu.memory_space<vmem>>, %arg4: memref<128x128xf32, #tpu.memory_space<vmem>>, %arg5: memref<1x1x128xf32, #tpu.memory_space<vmem>>) attributes {dimension_semantics = [#tpu.dimension_semantics<parallel>], iteration_bounds = array<i64: 1>, scalar_prefetch = 0 : i64, scratch_operands = 0 : i64, tpu.core_type = #tpu.core_type<tc>, window_params = [{transform_indices = @transform_0, window_bounds = array<i64: 1, 16, 128>}, {transform_indices = @transform_1, window_bounds = array<i64: 1, 16, 128>}, {pipeline_mode = #tpu.pipeline_mode<synchronous>, transform_indices = @transform_2, window_bounds = array<i64: 16, 16>}, {pipeline_mode = #tpu.pipeline_mode<synchronous>, transform_indices = @transform_3, window_bounds = array<i64: 128, 128>}, {transform_indices = @transform_4, window_bounds = array<i64: 1, 1, 128>}]} {
    %c0 = arith.constant 0 : index
    %c0_0 = arith.constant 0 : index
    %c0_1 = arith.constant 0 : index
    %0 = vector.load %arg1[%c0, %c0_0, %c0_1] : memref<1x16x128xf32, #tpu.memory_space<vmem>>, vector<1x16x128xf32>
    %1 = vector.shape_cast %0 : vector<1x16x128xf32> to vector<16x128xf32>
    %c0_2 = arith.constant 0 : index
    %c0_3 = arith.constant 0 : index
    %c0_4 = arith.constant 0 : index
    %2 = vector.load %arg2[%c0_2, %c0_3, %c0_4] : memref<1x16x128xf32, #tpu.memory_space<vmem>>, vector<1x16x128xf32>
    %3 = vector.shape_cast %2 : vector<1x16x128xf32> to vector<16x128xf32>
    %c0_5 = arith.constant 0 : index
    %c0_6 = arith.constant 0 : index
    %4 = vector.load %arg3[%c0_5, %c0_6] : memref<16x16xf32, #tpu.memory_space<vmem>>, vector<16x16xf32>
    %c0_7 = arith.constant 0 : index
    %c0_8 = arith.constant 0 : index
    %5 = vector.load %arg4[%c0_7, %c0_8] : memref<128x128xf32, #tpu.memory_space<vmem>>, vector<128x128xf32>
    %cst = arith.constant dense<0.000000e+00> : vector<16x128xf32>
    %6 = tpu.matmul %4, %1, %cst {dimension_numbers = #tpu.dot_dimension_numbers<[1], [0], [0], [1], [0, 0, 1, 1], [], []>, precision = #tpu.contract_precision<fp32>} : vector<16x16xf32>, vector<16x128xf32>, vector<16x128xf32> -> vector<16x128xf32>
    %cst_9 = arith.constant dense<0.000000e+00> : vector<16x128xf32>
    %7 = tpu.matmul %6, %5, %cst_9 {dimension_numbers = #tpu.dot_dimension_numbers<[1], [0], [0], [1], [0, 0, 1, 1], [], []>, precision = #tpu.contract_precision<fp32>} : vector<16x128xf32>, vector<128x128xf32>, vector<16x128xf32> -> vector<16x128xf32>
    %cst_10 = arith.constant dense<0.000000e+00> : vector<16x128xf32>
    %8 = tpu.matmul %4, %3, %cst_10 {dimension_numbers = #tpu.dot_dimension_numbers<[1], [0], [0], [1], [0, 0, 1, 1], [], []>, precision = #tpu.contract_precision<fp32>} : vector<16x16xf32>, vector<16x128xf32>, vector<16x128xf32> -> vector<16x128xf32>
    %cst_11 = arith.constant dense<0.000000e+00> : vector<16x128xf32>
    %9 = tpu.matmul %8, %5, %cst_11 {dimension_numbers = #tpu.dot_dimension_numbers<[1], [0], [0], [1], [0, 0, 1, 1], [], []>, precision = #tpu.contract_precision<fp32>} : vector<16x128xf32>, vector<128x128xf32>, vector<16x128xf32> -> vector<16x128xf32>
    %10 = arith.mulf %1, %1 : vector<16x128xf32>
    %cst_12 = arith.constant dense<0.000000e+00> : vector<16x128xf32>
    %11 = tpu.matmul %4, %10, %cst_12 {dimension_numbers = #tpu.dot_dimension_numbers<[1], [0], [0], [1], [0, 0, 1, 1], [], []>, precision = #tpu.contract_precision<fp32>} : vector<16x16xf32>, vector<16x128xf32>, vector<16x128xf32> -> vector<16x128xf32>
    %cst_13 = arith.constant dense<0.000000e+00> : vector<16x128xf32>
    %12 = tpu.matmul %11, %5, %cst_13 {dimension_numbers = #tpu.dot_dimension_numbers<[1], [0], [0], [1], [0, 0, 1, 1], [], []>, precision = #tpu.contract_precision<fp32>} : vector<16x128xf32>, vector<128x128xf32>, vector<16x128xf32> -> vector<16x128xf32>
    %13 = arith.mulf %3, %3 : vector<16x128xf32>
    %cst_14 = arith.constant dense<0.000000e+00> : vector<16x128xf32>
    %14 = tpu.matmul %4, %13, %cst_14 {dimension_numbers = #tpu.dot_dimension_numbers<[1], [0], [0], [1], [0, 0, 1, 1], [], []>, precision = #tpu.contract_precision<fp32>} : vector<16x16xf32>, vector<16x128xf32>, vector<16x128xf32> -> vector<16x128xf32>
    %cst_15 = arith.constant dense<0.000000e+00> : vector<16x128xf32>
    %15 = tpu.matmul %14, %5, %cst_15 {dimension_numbers = #tpu.dot_dimension_numbers<[1], [0], [0], [1], [0, 0, 1, 1], [], []>, precision = #tpu.contract_precision<fp32>} : vector<16x128xf32>, vector<128x128xf32>, vector<16x128xf32> -> vector<16x128xf32>
    %16 = arith.mulf %1, %3 : vector<16x128xf32>
    %cst_16 = arith.constant dense<0.000000e+00> : vector<16x128xf32>
    %17 = tpu.matmul %4, %16, %cst_16 {dimension_numbers = #tpu.dot_dimension_numbers<[1], [0], [0], [1], [0, 0, 1, 1], [], []>, precision = #tpu.contract_precision<fp32>} : vector<16x16xf32>, vector<16x128xf32>, vector<16x128xf32> -> vector<16x128xf32>
    %cst_17 = arith.constant dense<0.000000e+00> : vector<16x128xf32>
    %18 = tpu.matmul %17, %5, %cst_17 {dimension_numbers = #tpu.dot_dimension_numbers<[1], [0], [0], [1], [0, 0, 1, 1], [], []>, precision = #tpu.contract_precision<fp32>} : vector<16x128xf32>, vector<128x128xf32>, vector<16x128xf32> -> vector<16x128xf32>
    %19 = arith.mulf %7, %7 : vector<16x128xf32>
    %20 = arith.subf %12, %19 : vector<16x128xf32>
    %cst_18 = arith.constant 9.99999997E-7 : f32
    %21 = vector.broadcast %cst_18 : f32 to vector<16x128xf32>
    %22 = arith.maximumf %20, %21 : vector<16x128xf32>
    %23 = arith.mulf %9, %9 : vector<16x128xf32>
    %24 = arith.subf %15, %23 : vector<16x128xf32>
    %cst_19 = arith.constant 9.99999997E-7 : f32
    %25 = vector.broadcast %cst_19 : f32 to vector<16x128xf32>
    %26 = arith.maximumf %24, %25 : vector<16x128xf32>
    %27 = arith.mulf %7, %9 : vector<16x128xf32>
    %28 = arith.subf %18, %27 : vector<16x128xf32>
    %cst_20 = arith.constant 2.000000e+00 : f32
    %29 = vector.broadcast %cst_20 : f32 to vector<16x128xf32>
    %30 = arith.mulf %29, %7 : vector<16x128xf32>
    %31 = arith.mulf %30, %9 : vector<16x128xf32>
    %cst_21 = arith.constant 9.99999974E-5 : f32
    %32 = vector.broadcast %cst_21 : f32 to vector<16x128xf32>
    %33 = arith.addf %31, %32 : vector<16x128xf32>
    %cst_22 = arith.constant 2.000000e+00 : f32
    %34 = vector.broadcast %cst_22 : f32 to vector<16x128xf32>
    %35 = arith.mulf %34, %28 : vector<16x128xf32>
    %cst_23 = arith.constant 8.99999984E-4 : f32
    %36 = vector.broadcast %cst_23 : f32 to vector<16x128xf32>
    %37 = arith.addf %35, %36 : vector<16x128xf32>
    %38 = arith.mulf %33, %37 : vector<16x128xf32>
    %39 = arith.mulf %7, %7 : vector<16x128xf32>
    %40 = arith.mulf %9, %9 : vector<16x128xf32>
    %41 = arith.addf %39, %40 : vector<16x128xf32>
    %cst_24 = arith.constant 9.99999974E-5 : f32
    %42 = vector.broadcast %cst_24 : f32 to vector<16x128xf32>
    %43 = arith.addf %41, %42 : vector<16x128xf32>
    %44 = arith.addf %22, %26 : vector<16x128xf32>
    %cst_25 = arith.constant 8.99999984E-4 : f32
    %45 = vector.broadcast %cst_25 : f32 to vector<16x128xf32>
    %46 = arith.addf %44, %45 : vector<16x128xf32>
    %47 = arith.mulf %43, %46 : vector<16x128xf32>
    %48 = arith.divf %38, %47 : vector<16x128xf32>
    %cst_26 = arith.constant dense<0.000000e+00> : vector<128xf32>
    %49 = vector.multi_reduction <add>, %48, %cst_26 [0] : vector<16x128xf32> to vector<128xf32>
    %50 = vector.shape_cast %49 : vector<128xf32> to vector<1x128xf32>
    %c0_27 = arith.constant 0 : index
    %c0_28 = arith.constant 0 : index
    %c0_29 = arith.constant 0 : index
    %51 = vector.load %arg5[%c0_27, %c0_28, %c0_29] : memref<1x1x128xf32, #tpu.memory_space<vmem>>, vector<1x1x128xf32>
    %52 = vector.shape_cast %51 : vector<1x1x128xf32> to vector<1x128xf32>
    %53 = vector.shape_cast %50 : vector<1x128xf32> to vector<1x1x128xf32>
    tpu.vector_store %arg5[%c0_27, %c0_28, %c0_29], %53 {strides = array<i32>} : memref<1x1x128xf32, #tpu.memory_space<vmem>>, vector<1x1x128xf32>,
    return
  }
  func.func @transform_0(%arg0: i32) -> (i32, i32, i32) {
    %c0_i32 = arith.constant 0 : i32
    %c0_i32_0 = arith.constant 0 : i32
    %c0_i32_1 = arith.constant 0 : i32
    return %arg0, %c0_i32, %c0_i32_0 : i32, i32, i32
  }
  func.func @transform_1(%arg0: i32) -> (i32, i32, i32) {
    %c0_i32 = arith.constant 0 : i32
    %c0_i32_0 = arith.constant 0 : i32
    %c0_i32_1 = arith.constant 0 : i32
    return %arg0, %c0_i32, %c0_i32_0 : i32, i32, i32
  }
  func.func @transform_2(%arg0: i32) -> (i32, i32) {
    %c0_i32 = arith.constant 0 : i32
    %c0_i32_0 = arith.constant 0 : i32
    %c0_i32_1 = arith.constant 0 : i32
    return %c0_i32, %c0_i32_0 : i32, i32
  }
  func.func @transform_3(%arg0: i32) -> (i32, i32) {
    %c0_i32 = arith.constant 0 : i32
    %c0_i32_0 = arith.constant 0 : i32
    %c0_i32_1 = arith.constant 0 : i32
    return %c0_i32, %c0_i32_0 : i32, i32
  }
  func.func @transform_4(%arg0: i32) -> (i32, i32, i32) {
    %c0_i32 = arith.constant 0 : i32
    %c0_i32_0 = arith.constant 0 : i32
    %c0_i32_1 = arith.constant 0 : i32
    return %arg0, %c0_i32, %c0_i32_0 : i32, i32, i32
  }
}

</mosaic_0001>

<bundles_post_ra>
// kernel: tpu_custom_call.1
= control target key start
LH: loop header
LB: loop body
LE: loop exit
PB: predicated region body
PF: predicated region fallthrough
CT: control target
= control target key end

     0   :  { %9 = vsyncpa [#allocation3], 0  ;;  %s9714_s0 = inlined_call_operand.hbm [shape: f32[1,16,128], index: 0, kind: input, shape index: {}]   ;;  %s9715_s1 = inlined_call_operand.hbm [shape: f32[1,16,128], index: 1, kind: input, shape index: {}]   ;;  %s9716_s2 = inlined_call_operand.hbm [shape: f32[16,16], index: 2, kind: input, shape index: {}]   ;;  %s9717_s3 = inlined_call_operand.hbm [shape: f32[128,128], index: 3, kind: input, shape index: {}]   ;;  %s9718_s4 = inlined_call_operand.hbm [shape: f32[1,1,128], index: 4, kind: output, shape index: {}]  }
   0x1   :  { %10 = vsyncpa [#allocation6], 0 }
   0x2   :  { %11 = vsyncpa [#allocation9], 0 }
   0x3   :  { %12 = vsyncpa [#allocation4], 0  ;;  %s8150_s15 = smov [#allocation5]   ;;  %s8151_s17 = smov [#allocation2]  }
   0x4   :  { %s30_s16 = sshll.u32 %s8150_s15, 4  ;;  %s18_s18 = sshll.u32 %s8151_s17, 4  ;;  %s31_s16 = int_to_ptr.vmem [resolvable:$true] %s30_s16  ;;  %s19_s18 = int_to_ptr.vmem [resolvable:$true] %s18_s18 }
   0x5   :  { %s8050_s19 = scalar_lea.vmem %s31_s16, 256  ;;  %p8055_p1 = scmp.lt.s32.totalorder %s31_s16, %s31_s16 }
   0x6   :  { %p8051_p0 = scmp.ne.s32.totalorder %s31_s16, %s8050_s19  ;;  %p8056_p2 = scmp.lt.s32.totalorder %s8050_s19, %s8050_s19 }
   0x8   :  { %p8057_p3 = por %p8056_p2, %p8055_p1 }
   0xa   :  { %p8058_p4 = pnand %p8057_p3, %p8051_p0 }
   0xc   :  { %8061 = shalt.err (!%p8058_p4)
}
   0xd   :  { %s8152_s20 = smov 128   ;;  %s8153_s21 = smov 8  }
   0xe   :  { %36 = dma.hbm_to_vmem [thread:$0]  %s9715_s1, 256, %s31_s16, [#allocation6], %s8152_s20, %s8152_s20, %s8153_s21  }
   0xf   :  { %s8070_s24 = scalar_lea.vmem %s19_s18, 256  ;;  %p8075_p6 = scmp.lt.s32.totalorder %s19_s18, %s19_s18 }
  0x10   :  { %p8071_p5 = scmp.ne.s32.totalorder %s19_s18, %s8070_s24  ;;  %p8076_p7 = scmp.lt.s32.totalorder %s8070_s24, %s8070_s24 }
  0x12   :  { %p8077_p8 = por %p8076_p7, %p8075_p6 }
  0x14   :  { %p8078_p9 = pnand %p8077_p8, %p8071_p5 }
  0x16   :  { %8081 = shalt.err (!%p8078_p9)
}
  0x17   :  { %24 = dma.hbm_to_vmem [thread:$0]  %s9714_s0, 256, %s19_s18, [#allocation3], %s8152_s20, %s8152_s20, %s8153_s21  }
  0x18   :  { %s8154_s27 = smov [#allocation7]   ;;  %s8155_s29 = smov [#allocation8]  }
  0x19   :  { %s42_s28 = sshll.u32 %s8154_s27, 4  ;;  %s54_s30 = sshll.u32 %s8155_s29, 4  ;;  %s43_s28 = int_to_ptr.vmem [resolvable:$true] %s42_s28  ;;  %s55_s30 = int_to_ptr.vmem [resolvable:$true] %s54_s30 }
  0x1a   :  { %s8090_s1 = scalar_lea.vmem %s43_s28, 256  ;;  %p8095_p11 = scmp.lt.s32.totalorder %s43_s28, %s43_s28 }
  0x1b   :  { %p8091_p10 = scmp.ne.s32.totalorder %s43_s28, %s8090_s1  ;;  %p8096_p12 = scmp.lt.s32.totalorder %s8090_s1, %s8090_s1 }
  0x1d   :  { %p8097_p13 = por %p8096_p12, %p8095_p11 }
  0x1f   :  { %p8098_p0 = pnand %p8097_p13, %p8091_p10 }
  0x21   :  { %8101 = shalt.err (!%p8098_p0)
}
  0x22   :  { %48 = dma.hbm_to_vmem [thread:$0]  %s9716_s2, 256, %s43_s28, [#allocation6], %s8152_s20, %s8152_s20, %s8153_s21  }
  0x23   :  { %s8110_s0 = scalar_lea.vmem %s55_s30, 2048  ;;  %p8115_p2 = scmp.lt.s32.totalorder %s55_s30, %s55_s30 }
  0x24   :  { %p8111_p1 = scmp.ne.s32.totalorder %s55_s30, %s8110_s0  ;;  %p8116_p3 = scmp.lt.s32.totalorder %s8110_s0, %s8110_s0 }
  0x26   :  { %p8117_p4 = por %p8116_p3, %p8115_p2 }
  0x28   :  { %p8118_p5 = pnand %p8117_p4, %p8111_p1 }
  0x2a   :  { %8121 = shalt.err (!%p8118_p5)
}
  0x2b   :  { %60 = dma.hbm_to_vmem [thread:$0]  %s9717_s3, 2048, %s55_s30, [#allocation9], %s8152_s20, %s8152_s20, %s8153_s21  }
  0x2c   :  { %8142 = dma.done.wait [#allocation3], 256  }
  0x2d   :  { %8143 = vsyncadd [#allocation3], 4294967040 }
  0x2e   :  { %8144 = dma.done.wait [#allocation6], 512  }
  0x2f   :  { %8145 = vsyncadd [#allocation6], 4294966784 }
  0x30   :  { %8146 = dma.done.wait [#allocation9], 2048  }
  0x31   :  { %8147 = vsyncadd [#allocation9], 4294965248  ;;  %vm95_vm0 = vcmask 130048   ;;  %v74_v0 = vld [vmem:[#allocation2 + $0x8] sm:$0xff]  ;;  %v73_v1 = vld [vmem:[#allocation2] sm:$0xff]  ;;  %s8156_s2 = smov [#allocation10]  }
  0x32   :  { %v77_v2 = vld [vmem:[#allocation7] sm:$0xff]  ;;  %v8206_v3 = vand.u32 4294901760, %v74_v0  ;;  %v8208_v4 = vand.u32 4294901760, %v73_v1  ;;  %v78_v6 = vld [vmem:[#allocation7 + $0x8] sm:$0xff]  ;;  %v92_v23 = vld [vmem:[#allocation8 + $0x68] sm:$0xff]  ;;  %s6094_s3 = sshll.u32 %s8156_s2, 4  ;;  %s6095_s3 = int_to_ptr.vmem [resolvable:$true] %s6094_s3 }
  0x33   :  { %v97_v5 = vsel %vm95_vm0, %v77_v2, 0  ;;  %v100_v8 = vsel %vm95_vm0, %v78_v6, 0  ;;  %v94_v12 = vld [vmem:[#allocation8 + $0x78] sm:$0xff]  ;;  %v93_v17 = vld [vmem:[#allocation8 + $0x70] sm:$0xff]  ;;  %v91_v29 = vld [vmem:[#allocation8 + $0x60] sm:$0xff]  ;;  %v8246_v32 = vand.u32 4294901760, %v92_v23  ;;  %p8127_p7 = scmp.lt.s32.totalorder %s6095_s3, %s6095_s3 }
  0x34   :  { %v8210_v7 = vand.u32 4294901760, %v97_v5  ;;  %6765 = vmatprep.subr.mxu0 %v8206_v3  ;;  %v219_v9 = vsub.f32 %v74_v0, %v8206_v3  ;;  %v8214_v10 = vand.u32 4294901760, %v100_v8  ;;  %v226_v11 = vsub.f32 %v73_v1, %v8208_v4  ;;  %v90_v34 = vld [vmem:[#allocation8 + $0x58] sm:$0xff]  ;;  %v89_v37 = vld [vmem:[#allocation8 + $0x50] sm:$0xff]  ;;  %v88_v41 = vld [vmem:[#allocation8 + $0x48] sm:$0xff]  ;;  %s8122_s9 = scalar_lea.vmem %s6095_s3, 16 }
  0x35   :  { %6766 = vmatpush3.msra.mxu0 %v8206_v3  ;;  %v8230_v19 = vand.u32 4294901760, %v94_v12  ;;  %v8237_v25 = vand.u32 4294901760, %v93_v17  ;;  %v8254_v36 = vand.u32 4294901760, %v91_v29  ;;  %v8261_v39 = vsub.f32 %v92_v23, %v8246_v32  ;;  %v87_v45 = vld [vmem:[#allocation8 + $0x40] sm:$0xff]  ;;  %p8123_p6 = scmp.ne.s32.totalorder %s6095_s3, %s8122_s9  ;;  %s8126_s10 = scalar_lea.vmem %s6095_s3, 32 }
  0x36   :  { %9884 = vst [vmem:[#allocation15_spill] sm:$0xff] %v8210_v7  ;;  %9885 = vst [vmem:[#allocation16_spill] sm:$0xff] %v8214_v10  ;;  %v8219_v13 = vsub.f32 %v97_v5, %v8210_v7  ;;  %6776 = vmatprep.mubr.f32.mxu1 %v8210_v7  ;;  %6767 = vmatprep.subr.mxu0 %v8208_v4  ;;  %v220_v14 = vand.u32 4294901760, %v219_v9  ;;  %v8224_v15 = vsub.f32 %v100_v8, %v8214_v10  ;;  %p8128_p8 = scmp.lt.s32.totalorder %s8126_s10, %s8122_s9 }
  0x37   :  { %v227_v16 = vand.u32 4294901760, %v226_v11  ;;  %6768 = vmatpush3.msra.mxu0 %v8208_v4  ;;  %v8244_v31 = vsub.f32 %v94_v12, %v8230_v19  ;;  %v8252_v35 = vsub.f32 %v93_v17, %v8237_v25  ;;  %v8263_v40 = vand.u32 4294901760, %v90_v34  ;;  %v86_v12 = vld [vmem:[#allocation8 + $0x38] sm:$0xff] }
  0x38   :  { %9886 = vst [vmem:[#allocation17_spill] sm:$0xff] %v8219_v13  ;;  %9887 = vst [vmem:[#allocation18_spill] sm:$0xff] %v8224_v15  ;;  %v8228_v18 = vand.u32 4294901760, %v8219_v13  ;;  %v221_v20 = vsub.f32 %v219_v9, %v220_v14  ;;  %v8233_v21 = vand.u32 4294901760, %v8224_v15  ;;  %6779 = vmatprep.subr.mxu0 %v219_v9  ;;  %v8271_v43 = vsub.f32 %v91_v29, %v8254_v36  ;;  %p8129_p9 = por %p8128_p8, %p8127_p7 }
  0x39   :  { %v228_v22 = vsub.f32 %v226_v11, %v227_v16  ;;  %v8258_v38 = vand.u32 4294901760, %v8244_v31  ;;  %v8268_v42 = vand.u32 4294901760, %v8252_v35  ;;  %v8273_v44 = vand.u32 4294901760, %v89_v37 }
  0x3a   :  { %9888 = vst [vmem:[#allocation19_spill] sm:$0xff] %v8228_v18  ;;  %9889 = vst [vmem:[#allocation20_spill] sm:$0xff] %v8233_v21  ;;  %v172_v24 = vsub.f32 %v8219_v13, %v8228_v18  ;;  %v222_v26 = vand.u32 4294901760, %v221_v20  ;;  %v182_v27 = vsub.f32 %v8224_v15, %v8233_v21  ;;  %v8282_v47 = vand.u32 4294901760, %v8261_v39  ;;  %p8130_p10 = pnand %p8129_p9, %p8123_p6 }
  0x3b   :  { %v229_v28 = vand.u32 4294901760, %v228_v22  ;;  %v709_v46 = vsub.f32 %v8244_v31, %v8258_v38  ;;  %v8285_v48 = vsub.f32 %v90_v34, %v8263_v40  ;;  %v8287_v49 = vand.u32 4294901760, %v88_v41  ;;  %v84_v22 = vld [vmem:[#allocation8 + $0x28] sm:$0xff] }
  0x3c   :  { %v8241_v30 = vand.u32 4294901760, %v172_v24  ;;  %6772 = vmatprep.subr.mxu1 %v222_v26  ;;  %v8248_v33 = vand.u32 4294901760, %v182_v27  ;;  %v716_v50 = vsub.f32 %v8252_v35, %v8268_v42  ;;  %v8294_v51 = vand.u32 4294901760, %v8271_v43  ;;  %v83_v27 = vld [vmem:[#allocation8 + $0x20] sm:$0xff] }
  0x3d   :  { %6773 = vmatpush3.msra.mxu1 %v222_v26  ;;  %v8297_v52 = vsub.f32 %v89_v37, %v8273_v44  ;;  %v8299_v53 = vand.u32 4294901760, %v87_v45  ;;  %v8303_v54 = vand.u32 4294901760, %v709_v46  ;;  %v723_v55 = vsub.f32 %v8261_v39, %v8282_v47 }
  0x3e   :  { %9890 = vst [vmem:[#allocation21_spill] sm:$0xff] %v8241_v30  ;;  %9891 = vst [vmem:[#allocation22_spill] sm:$0xff] %v8248_v33  ;;  %6769 = vmatprep.mubr.f32.mxu0 %v8241_v30  ;;  %6774 = vmatprep.subr.mxu1 %v229_v28  ;;  %v8308_v56 = vand.u32 4294901760, %v8285_v48  ;;  %v8311_v57 = vsub.f32 %v88_v41, %v8287_v49  ;;  %v8317_v58 = vand.u32 4294901760, %v716_v50  ;;  %v8403_v26 = vand.u32 4294901760, %v84_v22  ;;  %v82_v41 = vld [vmem:[#allocation8 + $0x18] sm:$0xff] }
  0x3f   :  { %6770 = vmatmul.mubr.f32.vlgmr.msra.gmra.mxu0 %v8248_v33  ;;  %6775 = vmatpush3.msra.mxu1 %v229_v28  ;;  %9892 = vst [vmem:[#allocation23_spill] sm:$0xff] %v8303_v54  ;;  %v730_v59 = vsub.f32 %v8271_v43, %v8294_v51  ;;  %v8322_v60 = vand.u32 4294901760, %v8297_v52  ;;  %v8325_v61 = vsub.f32 %v87_v45, %v8299_v53  ;;  %v8331_v62 = vand.u32 4294901760, %v723_v55 }
  0x40   :  { %6780 = vmatpush3.msra.mxu0 %v219_v9  ;;  %6777 = vmatmul.mubr.f32.vlgmr.msra.gmra.mxu1 %v8214_v10  ;;  %9893 = vst [vmem:[#allocation24_spill] sm:$0xff] %v8308_v56  ;;  %9894 = vst [vmem:[#allocation25_spill] sm:$0xff] %v8317_v58  ;;  %v737_v63 = vsub.f32 %v8285_v48, %v8308_v56  ;;  %v8336_v0 = vand.u32 4294901760, %v8311_v57  ;;  %v8413_v34 = vsub.f32 %v84_v22, %v8403_v26  ;;  %v80_v22 = vld [vmem:[#allocation8 + $0x8] sm:$0xff] }
  0x41   :  { %6781 = vmatprep.subr.mxu0 %v226_v11  ;;  %6786 = vmatprep.subr.mxu1 %v8206_v3  ;;  %9895 = vst [vmem:[#allocation26_spill] sm:$0xff] %v8322_v60  ;;  %9896 = vst [vmem:[#allocation27_spill] sm:$0xff] %v8331_v62  ;;  %v8341_v1 = vand.u32 4294901760, %v730_v59  ;;  %v744_v2 = vsub.f32 %v8297_v52, %v8322_v60  ;;  %v8415_v37 = vand.u32 4294901760, %v83_v27  ;;  %v8430_v59 = vand.u32 4294901760, %v82_v41 }
  0x42   :  { %6782 = vmatpush3.msra.mxu0 %v226_v11  ;;  %6783 = vmatprep.mubr.f32.mxu0 %v8219_v13  ;;  %9897 = vst [vmem:[#allocation28_spill] sm:$0xff] %v8336_v0  ;;  %v751_v5 = vsub.f32 %v8311_v57, %v8336_v0  ;;  %v8424_v50 = vand.u32 4294901760, %v8413_v34 }
  0x43   :  { %6787 = vmatpush3.msra.mxu1 %v8206_v3  ;;  %6784 = vmatmul.mubr.f32.vlgmr.msra.gmra.mxu0 %v8224_v15  ;;  %9898 = vst [vmem:[#allocation29_spill] sm:$0xff] %v8341_v1  ;;  %v8360_v6 = vand.u32 4294901760, %v744_v2  ;;  %v8427_v55 = vsub.f32 %v83_v27, %v8415_v37 }
  0x44   :  { %6788 = vmatprep.subr.mxu1 %v8208_v4  ;;  %6793 = vmatprep.subr.mxu0 %v220_v14  ;;  %v8368_v9 = vand.u32 4294901760, %v751_v5  ;;  %9907 = vst [vmem:[#allocation38_spill] sm:$0xff] %v8424_v50  ;;  %v779_v5 = vsub.f32 %v8413_v34, %v8424_v50 }
  0x45   :  { %6789 = vmatpush3.msra.mxu1 %v8208_v4  ;;  %6790 = vmatprep.mubr.f32.mxu1 %v8228_v18  ;;  %9901 = vst [vmem:[#allocation32_spill] sm:$0xff] %v8360_v6 }
  0x46   :  { %6794 = vmatpush3.msra.mxu0 %v220_v14  ;;  %6791 = vmatmul.mubr.f32.vlgmr.msra.gmra.mxu1 %v8233_v21  ;;  %9902 = vst [vmem:[#allocation33_spill] sm:$0xff] %v8368_v9  ;;  %v8388_v14 = vand.u32 4294901760, %v86_v12  ;;  %v8449_v27 = vand.u32 4294901760, %v779_v5 }
  0x47   :  { %6795 = vmatprep.subr.mxu0 %v227_v16  ;;  %6800 = vmatprep.subr.mxu1 %v8206_v3 }
  0x48   :  { %6796 = vmatpush3.msra.mxu0 %v227_v16  ;;  %6797 = vmatprep.mubr.f32.mxu0 %v8210_v7  ;;  %v85_v16 = vld [vmem:[#allocation8 + $0x30] sm:$0xff]  ;;  %v8391_v17 = vsub.f32 %v86_v12, %v8388_v14  ;;  %9910 = vst [vmem:[#allocation41_spill] sm:$0xff] %v8449_v27 }
  0x49   :  { %6801 = vmatpush3.msra.mxu1 %v8206_v3  ;;  %6798 = vmatmul.mubr.f32.vlgmr.msra.gmra.mxu0 %v8214_v10  ;;  %v8347_v3 = vand.u32 4294901760, %v8325_v61  ;;  %v8393_v20 = vand.u32 4294901760, %v85_v16 }
  0x4a   :  { %6802 = vmatprep.subr.mxu1 %v8208_v4  ;;  %6804 = vmatprep.mubr.f32.mxu1 %v8210_v7  ;;  %v8398_v23 = vand.u32 4294901760, %v8391_v17 }
  0x4b   :  { %6803 = vmatpush3.msra.mxu1 %v8208_v4  ;;  %6807 = vmatprep.subr.mxu0 %v8230_v19  ;;  %9899 = vst [vmem:[#allocation30_spill] sm:$0xff] %v8347_v3  ;;  %v8352_v4 = vand.u32 4294901760, %v737_v63  ;;  %v758_v8 = vsub.f32 %v8325_v61, %v8347_v3  ;;  %v8401_v24 = vsub.f32 %v85_v16, %v8393_v20  ;;  %v81_v63 = vld [vmem:[#allocation8 + $0x10] sm:$0xff] }
  0x4c   :  { %6805 = vmatmul.mubr.f32.vlgmr.msra.gmra.mxu1 %v8214_v10  ;;  %6842 = vmatprep.subr.mxu1 %v8303_v54  ;;  %9904 = vst [vmem:[#allocation35_spill] sm:$0xff] %v8398_v23  ;;  %v765_v28 = vsub.f32 %v8391_v17, %v8398_v23  ;;  %v8441_v12 = vand.u32 4294901760, %v81_v63  ;;  %v8445_v16 = vsub.f32 %v82_v41, %v8430_v59 }
  0x4d   :  { %6843 = vmatpush3.msra.mxu1 %v8303_v54  ;;  %6808 = vmatpush3.msra.mxu0 %v8230_v19  ;;  %9900 = vst [vmem:[#allocation31_spill] sm:$0xff] %v8352_v4  ;;  %v8374_v11 = vand.u32 4294901760, %v758_v8  ;;  %v8410_v29 = vand.u32 4294901760, %v8401_v24  ;;  %v8439_v8 = vand.u32 4294901760, %v8427_v55 }
  0x4e   :  { %6844 = vmatprep.subr.mxu1 %v8317_v58  ;;  %6809 = vmatprep.subr.mxu0 %v8237_v25  ;;  %v8419_v45 = vand.u32 4294901760, %v765_v28  ;;  %v8461_v41 = vand.u32 4294901760, %v8445_v16 }
  0x4f   :  { %6845 = vmatpush3.msra.mxu1 %v8317_v58  ;;  %6810 = vmatpush3.msra.mxu0 %v8237_v25  ;;  %9903 = vst [vmem:[#allocation34_spill] sm:$0xff] %v8374_v11  ;;  %9905 = vst [vmem:[#allocation36_spill] sm:$0xff] %v8410_v29  ;;  %v772_v46 = vsub.f32 %v8401_v24, %v8410_v29  ;;  %v786_v28 = vsub.f32 %v8427_v55, %v8439_v8 }
  0x50   :  { %6846 = vmatprep.subr.mxu1 %v8331_v62  ;;  %6811 = vmatprep.subr.mxu0 %v8246_v32  ;;  %9906 = vst [vmem:[#allocation37_spill] sm:$0xff] %v8419_v45  ;;  %9909 = vst [vmem:[#allocation40_spill] sm:$0xff] %v8439_v8 }
  0x51   :  { %6847 = vmatpush3.msra.mxu1 %v8331_v62  ;;  %6812 = vmatpush3.msra.mxu0 %v8246_v32  ;;  %v8434_v2 = vand.u32 4294901760, %v772_v46  ;;  %v8454_v46 = vsub.f32 %v81_v63, %v8441_v12  ;;  %9911 = vst [vmem:[#allocation42_spill] sm:$0xff] %v8461_v41  ;;  %v8465_v5 = vand.u32 4294901760, %v786_v28 }
  0x52   :  { %6848 = vmatprep.subr.mxu1 %v8341_v1  ;;  %6813 = vmatprep.subr.mxu0 %v8254_v36 }
  0x53   :  { %6849 = vmatpush3.msra.mxu1 %v8341_v1  ;;  %6814 = vmatpush3.msra.mxu0 %v8254_v36  ;;  %9908 = vst [vmem:[#allocation39_spill] sm:$0xff] %v8434_v2  ;;  %9912 = vst [vmem:[#allocation43_spill] sm:$0xff] %v8465_v5 }
  0x54   :  { %6850 = vmatprep.subr.mxu1 %v8352_v4  ;;  %6815 = vmatprep.subr.mxu0 %v8263_v40 }
  0x55   :  { %6851 = vmatpush3.msra.mxu1 %v8352_v4  ;;  %6816 = vmatpush3.msra.mxu0 %v8263_v40 }
  0x56   :  { %6852 = vmatprep.subr.mxu1 %v8360_v6  ;;  %6817 = vmatprep.subr.mxu0 %v8273_v44 }
  0x57   :  { %6853 = vmatpush3.msra.mxu1 %v8360_v6  ;;  %6818 = vmatpush3.msra.mxu0 %v8273_v44 }
  0x58   :  { %6854 = vmatprep.subr.mxu1 %v8368_v9  ;;  %6819 = vmatprep.subr.mxu0 %v8287_v49 }
  0x59   :  { %6855 = vmatpush3.msra.mxu1 %v8368_v9  ;;  %6820 = vmatpush3.msra.mxu0 %v8287_v49  ;;  %v8468_v9 = vand.u32 4294901760, %v8454_v46 }
  0x5a   :  { %6856 = vmatprep.subr.mxu1 %v8374_v11  ;;  %6821 = vmatprep.subr.mxu0 %v8299_v53 }
  0x5b   :  { %6857 = vmatpush3.msra.mxu1 %v8374_v11  ;;  %6822 = vmatpush3.msra.mxu0 %v8299_v53  ;;  %v8456_v11 = vand.u32 4294901760, %v80_v22  ;;  %9913 = vst [vmem:[#allocation44_spill] sm:$0xff] %v8468_v9  ;;  %v800_v28 = vsub.f32 %v8454_v46, %v8468_v9 }
  0x5c   :  { %6823 = vmatprep.subr.mxu0 %v8388_v14  ;;  %6858 = vmatprep.subr.mxu1 %v8419_v45 }
  0x5d   :  { %6824 = vmatpush3.msra.mxu0 %v8388_v14  ;;  %6859 = vmatpush3.msra.mxu1 %v8419_v45  ;;  %v79_v45 = vld [vmem:[#allocation8] sm:$0xff]  ;;  %v8471_v63 = vsub.f32 %v80_v22, %v8456_v11  ;;  %v8494_v1 = vand.u32 4294901760, %v800_v28 }
  0x5e   :  { %6825 = vmatprep.subr.mxu0 %v8393_v20  ;;  %6860 = vmatprep.subr.mxu1 %v8434_v2  ;;  %v8473_v6 = vand.u32 4294901760, %v79_v45 }
  0x5f   :  { %6826 = vmatpush3.msra.mxu0 %v8393_v20  ;;  %6861 = vmatpush3.msra.mxu1 %v8434_v2  ;;  %v793_v2 = vsub.f32 %v8445_v16, %v8461_v41  ;;  %v8484_v4 = vand.u32 4294901760, %v8471_v63  ;;  %9916 = vst [vmem:[#allocation47_spill] sm:$0xff] %v8494_v1 }
  0x60   :  { %6827 = vmatprep.subr.mxu0 %v8403_v26  ;;  %6862 = vmatprep.subr.mxu1 %v8449_v27  ;;  %v8487_v22 = vsub.f32 %v79_v45, %v8473_v6 }
  0x61   :  { %6828 = vmatpush3.msra.mxu0 %v8403_v26  ;;  %6863 = vmatpush3.msra.mxu1 %v8449_v27  ;;  %9914 = vst [vmem:[#allocation45_spill] sm:$0xff] %v8484_v4  ;;  %v8491_v27 = vand.u32 4294901760, %v793_v2  ;;  %v807_v62 = vsub.f32 %v8471_v63, %v8484_v4 }
  0x62   :  { %6829 = vmatprep.subr.mxu0 %v8415_v37  ;;  %6864 = vmatprep.subr.mxu1 %v8465_v5  ;;  %v8499_v58 = vand.u32 4294901760, %v8487_v22 }
  0x63   :  { %6830 = vmatpush3.msra.mxu0 %v8415_v37  ;;  %6865 = vmatpush3.msra.mxu1 %v8465_v5  ;;  %9915 = vst [vmem:[#allocation46_spill] sm:$0xff] %v8491_v27  ;;  %v8505_v45 = vand.u32 4294901760, %v807_v62 }
  0x64   :  { %6831 = vmatprep.subr.mxu0 %v8430_v59  ;;  %9917 = vst [vmem:[#allocation48_spill] sm:$0xff] %v8499_v58  ;;  %6866 = vmatprep.subr.mxu1 %v8491_v27  ;;  %v814_v2 = vsub.f32 %v8487_v22, %v8499_v58 }
  0x65   :  { %6832 = vmatpush3.msra.mxu0 %v8430_v59  ;;  %6867 = vmatpush3.msra.mxu1 %v8491_v27  ;;  %9918 = vst [vmem:[#allocation49_spill] sm:$0xff] %v8505_v45 }
  0x66   :  { %6833 = vmatprep.subr.mxu0 %v8441_v12  ;;  %6868 = vmatprep.subr.mxu1 %v8494_v1  ;;  %v8511_v28 = vand.u32 4294901760, %v814_v2 }
  0x67   :  { %6834 = vmatpush3.msra.mxu0 %v8441_v12  ;;  %6869 = vmatpush3.msra.mxu1 %v8494_v1 }
  0x68   :  { %6835 = vmatprep.subr.mxu0 %v8456_v11  ;;  %9919 = vst [vmem:[#allocation50_spill] sm:$0xff] %v8511_v28  ;;  %6870 = vmatprep.subr.mxu1 %v8505_v45 }
  0x69   :  { %6836 = vmatpush3.msra.mxu0 %v8456_v11  ;;  %6871 = vmatpush3.msra.mxu1 %v8505_v45 }
  0x6a   :  { %6837 = vmatprep.subr.mxu0 %v8473_v6  ;;  %6872 = vmatprep.subr.mxu1 %v8511_v28 }
  0x6b   :  { %6838 = vmatpush3.msra.mxu0 %v8473_v6  ;;  %6873 = vmatpush3.msra.mxu1 %v8511_v28 }
  0x6c   :  { %6877 = vmatprep.subr.mxu0 %v8244_v31  ;;  %6912 = vmatprep.subr.mxu1 %v8230_v19 }
  0xff   :  { %v6771_v62 = vpop.f32.mrf.mxu0 }
 0x100   :  { %v6778_v5 = vpop.f32.mrf.mxu1 }
 0x101   :  { %v175_v27 = vpop.f32.mrf.mxu0  ;;  %v273_v54 = vadd.f32 %v6778_v5, %v6771_v62  ;;  %v9920_v62 = vld [vmem:[#allocation38_spill] sm:$0xff] }
 0x102   :  { %v266_v21 = vpop.f32.mrf.mxu1 }
 0x103   :  { %v267_v15 = vadd.f32 %v266_v21, %v175_v27  ;;  %v6785_v18 = vpop.f32.mrf.mxu0 }
 0x104   :  { %v356_v1 = vadd.f32 %v6785_v18, %v273_v54 }
 0x105   :  { %v348_v2 = vpop.f32.mrf.mxu0 }
 0x106   :  { %v349_v13 = vadd.f32 %v348_v2, %v267_v15  ;;  %v6792_v33 = vpop.f32.mrf.mxu1 }
 0x107   :  { %v439_v30 = vadd.f32 %v6792_v33, %v356_v1  ;;  %v75_v1 = vld [vmem:[#allocation5] sm:$0xff] }
 0x108   :  { %v430_v10 = vpop.f32.mrf.mxu1 }
 0x109   :  { %v431_v45 = vadd.f32 %v430_v10, %v349_v13  ;;  %v6799_v7 = vpop.f32.mrf.mxu0 }
 0x10a   :  { %v522_v58 = vadd.f32 %v6799_v7, %v439_v30 }
 0x10b   :  { %v515_v4 = vpop.f32.mrf.mxu0 }
 0x10c   :  { %v6806_v28 = vpop.f32.mrf.mxu1  ;;  %v516_v9 = vadd.f32 %v515_v4, %v431_v45 }
 0x10d   :  { %v601_v41 = vadd.f32 %v6806_v28, %v522_v58  ;;  %v76_v58 = vld [vmem:[#allocation5 + $0x8] sm:$0xff] }
 0x10e   :  { %v594_v8 = vpop.f32.mrf.mxu1  ;;  %v8620_v4 = vand.u32 4294901760, %v76_v58 }
 0x10f   :  { %v8518_v50 = vand.u32 4294901760, %v601_v41  ;;  %v595_v5 = vadd.f32 %v594_v8, %v516_v9  ;;  %v8626_v9 = vand.u32 4294901760, %v75_v1 }
 0x110   :  { %v1405_v8 = vsub.f32 %v76_v58, %v8620_v4  ;;  %v9929_v58 = vld [vmem:[#allocation22_spill] sm:$0xff] }
 0x111   :  { %v8521_v21 = vsub.f32 %v601_v41, %v8518_v50  ;;  %v8523_v18 = vand.u32 4294901760, %v595_v5  ;;  %v1412_v27 = vsub.f32 %v75_v1, %v8626_v9  ;;  %v9931_v1 = vld [vmem:[#allocation19_spill] sm:$0xff] }
 0x112   :  { %v1406_v41 = vand.u32 4294901760, %v1405_v8 }
 0x113   :  { %v697_v15 = vand.u32 4294901760, %v8521_v21  ;;  %v686_v33 = vsub.f32 %v595_v5, %v8523_v18  ;;  %6874 = vmatprep.mubr.f32.mxu1 %v8523_v18  ;;  %v1413_v45 = vand.u32 4294901760, %v1412_v27  ;;  %v9921_v5 = vld [vmem:[#allocation40_spill] sm:$0xff] }
 0x114   :  { %6875 = vmatmul.mubr.f32.vlgmr.msra.gmra.mxu1 %v8518_v50  ;;  %v1407_v28 = vsub.f32 %v1405_v8, %v1406_v41 }
 0x115   :  { %6913 = vmatpush3.msra.mxu1 %v8230_v19  ;;  %v687_v7 = vand.u32 4294901760, %v686_v33  ;;  %v698_v10 = vsub.f32 %v8521_v21, %v697_v15  ;;  %v1414_v2 = vsub.f32 %v1412_v27, %v1413_v45 }
 0x116   :  { %6914 = vmatprep.subr.mxu1 %v8237_v25 }
 0x117   :  { %6915 = vmatpush3.msra.mxu1 %v8237_v25  ;;  %6944 = vmatprep.mubr.f32.mxu1 %v687_v7  ;;  %v688_v13 = vsub.f32 %v686_v33, %v687_v7  ;;  %v699_v54 = vand.u32 4294901760, %v698_v10  ;;  %v9924_v7 = vld [vmem:[#allocation45_spill] sm:$0xff]  ;;  %v9925_v10 = vld [vmem:[#allocation48_spill] sm:$0xff] }
 0x118   :  { %6916 = vmatprep.subr.mxu1 %v8246_v32 }
 0x119   :  { %6917 = vmatpush3.msra.mxu1 %v8246_v32  ;;  %v689_v30 = vand.u32 4294901760, %v688_v13  ;;  %v9926_v13 = vld [vmem:[#allocation15_spill] sm:$0xff] }
 0x11a   :  { %6918 = vmatprep.subr.mxu1 %v8254_v36 }
 0x11b   :  { %6919 = vmatpush3.msra.mxu1 %v8254_v36  ;;  %6839 = vmatprep.mubr.f32.mxu0 %v689_v30  ;;  %v9927_v30 = vld [vmem:[#allocation16_spill] sm:$0xff] }
 0x11c   :  { %6920 = vmatprep.subr.mxu1 %v8263_v40  ;;  %6840 = vmatmul.mubr.f32.vlgmr.msra.gmra.mxu0 %v699_v54  ;;  %v9928_v54 = vld [vmem:[#allocation21_spill] sm:$0xff] }
 0x11d   :  { %6878 = vmatpush3.msra.mxu0 %v8244_v31  ;;  %6921 = vmatpush3.msra.mxu1 %v8263_v40 }
 0x11e   :  { %6879 = vmatprep.subr.mxu0 %v8252_v35  ;;  %6909 = vmatprep.mubr.f32.mxu0 %v686_v33  ;;  %v9923_v33 = vld [vmem:[#allocation44_spill] sm:$0xff] }
 0x11f   :  { %6922 = vmatprep.subr.mxu1 %v8273_v44  ;;  %6880 = vmatpush3.msra.mxu0 %v8252_v35 }
 0x120   :  { %6923 = vmatpush3.msra.mxu1 %v8273_v44  ;;  %6881 = vmatprep.subr.mxu0 %v8261_v39 }
 0x121   :  { %6924 = vmatprep.subr.mxu1 %v8287_v49  ;;  %6882 = vmatpush3.msra.mxu0 %v8261_v39 }
 0x122   :  { %6925 = vmatpush3.msra.mxu1 %v8287_v49  ;;  %6883 = vmatprep.subr.mxu0 %v8271_v43 }
 0x123   :  { %6926 = vmatprep.subr.mxu1 %v8299_v53  ;;  %6884 = vmatpush3.msra.mxu0 %v8271_v43 }
 0x124   :  { %6927 = vmatpush3.msra.mxu1 %v8299_v53  ;;  %6885 = vmatprep.subr.mxu0 %v8285_v48 }
 0x125   :  { %6928 = vmatprep.subr.mxu1 %v8388_v14  ;;  %6886 = vmatpush3.msra.mxu0 %v8285_v48 }
 0x126   :  { %6929 = vmatpush3.msra.mxu1 %v8388_v14  ;;  %6887 = vmatprep.subr.mxu0 %v8297_v52 }
 0x127   :  { %6930 = vmatprep.subr.mxu1 %v8393_v20  ;;  %6888 = vmatpush3.msra.mxu0 %v8297_v52 }
 0x128   :  { %6931 = vmatpush3.msra.mxu1 %v8393_v20  ;;  %6889 = vmatprep.subr.mxu0 %v8311_v57 }
 0x129   :  { %6932 = vmatprep.subr.mxu1 %v8403_v26  ;;  %6890 = vmatpush3.msra.mxu0 %v8311_v57 }
 0x12a   :  { %6933 = vmatpush3.msra.mxu1 %v8403_v26  ;;  %6891 = vmatprep.subr.mxu0 %v8325_v61 }
 0x12b   :  { %6934 = vmatprep.subr.mxu1 %v8415_v37  ;;  %6892 = vmatpush3.msra.mxu0 %v8325_v61 }
 0x12c   :  { %6935 = vmatpush3.msra.mxu1 %v8415_v37  ;;  %6893 = vmatprep.subr.mxu0 %v8391_v17 }
 0x12d   :  { %6936 = vmatprep.subr.mxu1 %v8430_v59  ;;  %6894 = vmatpush3.msra.mxu0 %v8391_v17 }
 0x12e   :  { %6937 = vmatpush3.msra.mxu1 %v8430_v59  ;;  %6895 = vmatprep.subr.mxu0 %v8401_v24 }
 0x12f   :  { %6938 = vmatprep.subr.mxu1 %v8441_v12  ;;  %6896 = vmatpush3.msra.mxu0 %v8401_v24 }
 0x130   :  { %6939 = vmatpush3.msra.mxu1 %v8441_v12  ;;  %6897 = vmatprep.subr.mxu0 %v8413_v34 }
 0x131   :  { %6940 = vmatprep.subr.mxu1 %v8456_v11  ;;  %6898 = vmatpush3.msra.mxu0 %v8413_v34 }
 0x132   :  { %6941 = vmatpush3.msra.mxu1 %v8456_v11  ;;  %6899 = vmatprep.subr.mxu0 %v8427_v55 }
 0x133   :  { %6942 = vmatprep.subr.mxu1 %v8473_v6  ;;  %6900 = vmatpush3.msra.mxu0 %v8427_v55 }
 0x134   :  { %6943 = vmatpush3.msra.mxu1 %v8473_v6  ;;  %6901 = vmatprep.subr.mxu0 %v8445_v16 }
 0x135   :  { %6945 = vmatmul.mubr.f32.vlgmr.msra.gmra.mxu1 %v697_v15  ;;  %6982 = vmatprep.subr.mxu1 %v8230_v19  ;;  %v1415_v15 = vand.u32 4294901760, %v1414_v2  ;;  %v9933_v2 = vld [vmem:[#allocation20_spill] sm:$0xff] }
 0x136   :  { %6902 = vmatpush3.msra.mxu0 %v8445_v16  ;;  %6983 = vmatpush3.msra.mxu1 %v8230_v19 }
 0x137   :  { %7014 = vmatprep.mubr.f32.mxu1 %v8523_v18  ;;  %6903 = vmatprep.subr.mxu0 %v8454_v46 }
 0x138   :  { %6984 = vmatprep.subr.mxu1 %v8237_v25  ;;  %6904 = vmatpush3.msra.mxu0 %v8454_v46 }
 0x139   :  { %6985 = vmatpush3.msra.mxu1 %v8237_v25  ;;  %6905 = vmatprep.subr.mxu0 %v8471_v63 }
 0x13a   :  { %6986 = vmatprep.subr.mxu1 %v8246_v32  ;;  %6906 = vmatpush3.msra.mxu0 %v8471_v63 }
 0x13b   :  { %6987 = vmatpush3.msra.mxu1 %v8246_v32  ;;  %6907 = vmatprep.subr.mxu0 %v8487_v22 }
 0x13c   :  { %6988 = vmatprep.subr.mxu1 %v8254_v36  ;;  %6908 = vmatpush3.msra.mxu0 %v8487_v22 }
 0x13d   :  { %6989 = vmatpush3.msra.mxu1 %v8254_v36  ;;  %6910 = vmatmul.mubr.f32.vlgmr.msra.gmra.mxu0 %v8521_v21  ;;  %v1408_v21 = vand.u32 4294901760, %v1407_v28  ;;  %v9932_v28 = vld [vmem:[#allocation18_spill] sm:$0xff] }
 0x13e   :  { %6947 = vmatprep.subr.mxu0 %v8258_v38  ;;  %6990 = vmatprep.subr.mxu1 %v8263_v40 }
 0x13f   :  { %6948 = vmatpush3.msra.mxu0 %v8258_v38  ;;  %6979 = vmatprep.mubr.f32.mxu0 %v8523_v18  ;;  %v9922_v18 = vld [vmem:[#allocation42_spill] sm:$0xff] }
 0x140   :  { %6991 = vmatpush3.msra.mxu1 %v8263_v40  ;;  %6949 = vmatprep.subr.mxu0 %v8268_v42 }
 0x141   :  { %6992 = vmatprep.subr.mxu1 %v8273_v44  ;;  %6950 = vmatpush3.msra.mxu0 %v8268_v42 }
 0x142   :  { %6993 = vmatpush3.msra.mxu1 %v8273_v44  ;;  %6951 = vmatprep.subr.mxu0 %v8282_v47 }
 0x143   :  { %6994 = vmatprep.subr.mxu1 %v8287_v49  ;;  %6952 = vmatpush3.msra.mxu0 %v8282_v47 }
 0x144   :  { %6995 = vmatpush3.msra.mxu1 %v8287_v49  ;;  %6953 = vmatprep.subr.mxu0 %v8294_v51 }
 0x145   :  { %6996 = vmatprep.subr.mxu1 %v8299_v53  ;;  %6954 = vmatpush3.msra.mxu0 %v8294_v51 }
 0x146   :  { %6997 = vmatpush3.msra.mxu1 %v8299_v53  ;;  %6955 = vmatprep.subr.mxu0 %v8308_v56 }
 0x147   :  { %6998 = vmatprep.subr.mxu1 %v8388_v14  ;;  %6956 = vmatpush3.msra.mxu0 %v8308_v56 }
 0x148   :  { %6999 = vmatpush3.msra.mxu1 %v8388_v14  ;;  %6957 = vmatprep.subr.mxu0 %v8322_v60 }
 0x149   :  { %7000 = vmatprep.subr.mxu1 %v8393_v20  ;;  %6958 = vmatpush3.msra.mxu0 %v8322_v60 }
 0x14a   :  { %7001 = vmatpush3.msra.mxu1 %v8393_v20  ;;  %6959 = vmatprep.subr.mxu0 %v8336_v0 }
 0x14b   :  { %7002 = vmatprep.subr.mxu1 %v8403_v26  ;;  %6960 = vmatpush3.msra.mxu0 %v8336_v0 }
 0x14c   :  { %7003 = vmatpush3.msra.mxu1 %v8403_v26  ;;  %6961 = vmatprep.subr.mxu0 %v8347_v3 }
 0x14d   :  { %7004 = vmatprep.subr.mxu1 %v8415_v37  ;;  %6962 = vmatpush3.msra.mxu0 %v8347_v3 }
 0x14e   :  { %7005 = vmatpush3.msra.mxu1 %v8415_v37  ;;  %6963 = vmatprep.subr.mxu0 %v8398_v23 }
 0x14f   :  { %7006 = vmatprep.subr.mxu1 %v8430_v59  ;;  %6964 = vmatpush3.msra.mxu0 %v8398_v23 }
 0x150   :  { %7007 = vmatpush3.msra.mxu1 %v8430_v59  ;;  %6965 = vmatprep.subr.mxu0 %v8410_v29 }
 0x151   :  { %7008 = vmatprep.subr.mxu1 %v8441_v12  ;;  %6966 = vmatpush3.msra.mxu0 %v8410_v29 }
 0x152   :  { %7009 = vmatpush3.msra.mxu1 %v8441_v12  ;;  %6967 = vmatprep.subr.mxu0 %v9920_v62 }
 0x153   :  { %7010 = vmatprep.subr.mxu1 %v8456_v11  ;;  %6968 = vmatpush3.msra.mxu0 %v9920_v62 }
 0x154   :  { %7011 = vmatpush3.msra.mxu1 %v8456_v11  ;;  %6969 = vmatprep.subr.mxu0 %v9921_v5 }
 0x155   :  { %7012 = vmatprep.subr.mxu1 %v8473_v6  ;;  %6970 = vmatpush3.msra.mxu0 %v9921_v5 }
 0x156   :  { %7013 = vmatpush3.msra.mxu1 %v8473_v6  ;;  %6971 = vmatprep.subr.mxu0 %v9922_v18 }
 0x157   :  { %7015 = vmatmul.mubr.f32.vlgmr.msra.gmra.mxu1 %v8518_v50  ;;  %6972 = vmatpush3.msra.mxu0 %v9922_v18 }
 0x158   :  { %6973 = vmatprep.subr.mxu0 %v9923_v33  ;;  %7024 = vmatprep.subr.mxu1 %v1408_v21 }
 0x159   :  { %6974 = vmatpush3.msra.mxu0 %v9923_v33  ;;  %7025 = vmatpush3.msra.mxu1 %v1408_v21  ;;  %v9940_v21 = vld [vmem:[#allocation33_spill] sm:$0xff] }
 0x15a   :  { %6975 = vmatprep.subr.mxu0 %v9924_v7  ;;  %7026 = vmatprep.subr.mxu1 %v1415_v15 }
 0x15b   :  { %6976 = vmatpush3.msra.mxu0 %v9924_v7  ;;  %7027 = vmatpush3.msra.mxu1 %v1415_v15  ;;  %v9941_v15 = vld [vmem:[#allocation34_spill] sm:$0xff] }
 0x15c   :  { %6977 = vmatprep.subr.mxu0 %v9925_v10  ;;  %7028 = vmatprep.mubr.f32.mxu1 %v9926_v13 }
 0x15d   :  { %6978 = vmatpush3.msra.mxu0 %v9925_v10  ;;  %7029 = vmatmul.mubr.f32.vlgmr.msra.gmra.mxu1 %v9927_v30 }
 0x15e   :  { %6980 = vmatmul.mubr.f32.vlgmr.msra.gmra.mxu0 %v8518_v50  ;;  %7017 = vmatprep.subr.mxu0 %v8620_v4  ;;  %v9930_v50 = vld [vmem:[#allocation17_spill] sm:$0xff] }
 0x15f   :  { %7018 = vmatpush3.msra.mxu0 %v8620_v4  ;;  %7021 = vmatprep.mubr.f32.mxu0 %v9928_v54 }
 0x160   :  { %7019 = vmatprep.subr.mxu0 %v8626_v9  ;;  %7038 = vmatprep.subr.mxu1 %v8620_v4 }
 0x161   :  { %7020 = vmatpush3.msra.mxu0 %v8626_v9  ;;  %7039 = vmatpush3.msra.mxu1 %v8620_v4 }
 0x162   :  { %7022 = vmatmul.mubr.f32.vlgmr.msra.gmra.mxu0 %v9929_v58  ;;  %7031 = vmatprep.subr.mxu0 %v1405_v8 }
 0x163   :  { %7032 = vmatpush3.msra.mxu0 %v1405_v8  ;;  %7040 = vmatprep.subr.mxu1 %v8626_v9  ;;  %v9934_v8 = vld [vmem:[#allocation23_spill] sm:$0xff] }
 0x164   :  { %7033 = vmatprep.subr.mxu0 %v1412_v27  ;;  %7035 = vmatprep.mubr.f32.mxu0 %v9930_v50 }
 0x165   :  { %7034 = vmatpush3.msra.mxu0 %v1412_v27  ;;  %7041 = vmatpush3.msra.mxu1 %v8626_v9  ;;  %v9937_v27 = vld [vmem:[#allocation29_spill] sm:$0xff] }
 0x166   :  { %7042 = vmatprep.mubr.f32.mxu1 %v9931_v1  ;;  %7036 = vmatmul.mubr.f32.vlgmr.msra.gmra.mxu0 %v9932_v28 }
 0x167   :  { %7043 = vmatmul.mubr.f32.vlgmr.msra.gmra.mxu1 %v9933_v2  ;;  %7045 = vmatprep.subr.mxu0 %v1406_v41 }
 0x168   :  { %7052 = vmatprep.subr.mxu1 %v8620_v4  ;;  %7046 = vmatpush3.msra.mxu0 %v1406_v41  ;;  %v9938_v41 = vld [vmem:[#allocation31_spill] sm:$0xff] }
 0x169   :  { %7053 = vmatpush3.msra.mxu1 %v8620_v4  ;;  %7047 = vmatprep.subr.mxu0 %v1413_v45  ;;  %v9935_v4 = vld [vmem:[#allocation25_spill] sm:$0xff] }
 0x16a   :  { %7054 = vmatprep.subr.mxu1 %v8626_v9  ;;  %7048 = vmatpush3.msra.mxu0 %v1413_v45  ;;  %v9939_v45 = vld [vmem:[#allocation32_spill] sm:$0xff] }
 0x16b   :  { %7049 = vmatprep.mubr.f32.mxu0 %v9926_v13  ;;  %7055 = vmatpush3.msra.mxu1 %v8626_v9  ;;  %v9936_v9 = vld [vmem:[#allocation27_spill] sm:$0xff] }
 0x16c   :  { %7056 = vmatprep.mubr.f32.mxu1 %v9926_v13  ;;  %7050 = vmatmul.mubr.f32.vlgmr.msra.gmra.mxu0 %v9927_v30 }
 0x16d   :  { %7057 = vmatmul.mubr.f32.vlgmr.msra.gmra.mxu1 %v9927_v30  ;;  %7094 = vmatprep.subr.mxu1 %v9934_v8 }
 0x16e   :  { %7095 = vmatpush3.msra.mxu1 %v9934_v8  ;;  %7059 = vmatprep.subr.mxu0 %v8230_v19 }
 0x16f   :  { %7096 = vmatprep.subr.mxu1 %v9935_v4  ;;  %7060 = vmatpush3.msra.mxu0 %v8230_v19 }
 0x170   :  { %7097 = vmatpush3.msra.mxu1 %v9935_v4  ;;  %7061 = vmatprep.subr.mxu0 %v8237_v25 }
 0x171   :  { %7098 = vmatprep.subr.mxu1 %v9936_v9  ;;  %7062 = vmatpush3.msra.mxu0 %v8237_v25 }
 0x172   :  { %7099 = vmatpush3.msra.mxu1 %v9936_v9  ;;  %7063 = vmatprep.subr.mxu0 %v8246_v32 }
 0x173   :  { %7100 = vmatprep.subr.mxu1 %v9937_v27  ;;  %7064 = vmatpush3.msra.mxu0 %v8246_v32 }
 0x174   :  { %7101 = vmatpush3.msra.mxu1 %v9937_v27  ;;  %7065 = vmatprep.subr.mxu0 %v8254_v36 }
 0x175   :  { %7102 = vmatprep.subr.mxu1 %v9938_v41  ;;  %7066 = vmatpush3.msra.mxu0 %v8254_v36 }
 0x176   :  { %7103 = vmatpush3.msra.mxu1 %v9938_v41  ;;  %7067 = vmatprep.subr.mxu0 %v8263_v40  ;;  %v9942_v41 = vld [vmem:[#allocation37_spill] sm:$0xff] }
 0x177   :  { %7104 = vmatprep.subr.mxu1 %v9939_v45  ;;  %7068 = vmatpush3.msra.mxu0 %v8263_v40 }
 0x178   :  { %7105 = vmatpush3.msra.mxu1 %v9939_v45  ;;  %7069 = vmatprep.subr.mxu0 %v8273_v44  ;;  %v9943_v45 = vld [vmem:[#allocation39_spill] sm:$0xff] }
 0x179   :  { %7106 = vmatprep.subr.mxu1 %v9940_v21  ;;  %7070 = vmatpush3.msra.mxu0 %v8273_v44 }
 0x17a   :  { %7107 = vmatpush3.msra.mxu1 %v9940_v21  ;;  %7071 = vmatprep.subr.mxu0 %v8287_v49  ;;  %v9944_v21 = vld [vmem:[#allocation41_spill] sm:$0xff] }
 0x17b   :  { %7108 = vmatprep.subr.mxu1 %v9941_v15  ;;  %7072 = vmatpush3.msra.mxu0 %v8287_v49 }
 0x17c   :  { %7109 = vmatpush3.msra.mxu1 %v9941_v15  ;;  %7073 = vmatprep.subr.mxu0 %v8299_v53  ;;  %v9945_v15 = vld [vmem:[#allocation43_spill] sm:$0xff] }
 0x17d   :  { %7110 = vmatprep.subr.mxu1 %v9942_v41  ;;  %7074 = vmatpush3.msra.mxu0 %v8299_v53 }
 0x17e   :  { %7111 = vmatpush3.msra.mxu1 %v9942_v41  ;;  %7075 = vmatprep.subr.mxu0 %v8388_v14  ;;  %v9946_v41 = vld [vmem:[#allocation46_spill] sm:$0xff] }
 0x17f   :  { %7112 = vmatprep.subr.mxu1 %v9943_v45  ;;  %7076 = vmatpush3.msra.mxu0 %v8388_v14 }
 0x180   :  { %7113 = vmatpush3.msra.mxu1 %v9943_v45  ;;  %7077 = vmatprep.subr.mxu0 %v8393_v20  ;;  %v9947_v45 = vld [vmem:[#allocation47_spill] sm:$0xff] }
 0x181   :  { %7114 = vmatprep.subr.mxu1 %v9944_v21  ;;  %7078 = vmatpush3.msra.mxu0 %v8393_v20 }
 0x182   :  { %7115 = vmatpush3.msra.mxu1 %v9944_v21  ;;  %7079 = vmatprep.subr.mxu0 %v8403_v26  ;;  %v9948_v21 = vld [vmem:[#allocation49_spill] sm:$0xff] }
 0x183   :  { %7116 = vmatprep.subr.mxu1 %v9945_v15  ;;  %7080 = vmatpush3.msra.mxu0 %v8403_v26 }
 0x184   :  { %7117 = vmatpush3.msra.mxu1 %v9945_v15  ;;  %7081 = vmatprep.subr.mxu0 %v8415_v37  ;;  %v9949_v15 = vld [vmem:[#allocation50_spill] sm:$0xff] }
 0x185   :  { %7118 = vmatprep.subr.mxu1 %v9946_v41  ;;  %7082 = vmatpush3.msra.mxu0 %v8415_v37 }
 0x186   :  { %7119 = vmatpush3.msra.mxu1 %v9946_v41  ;;  %7083 = vmatprep.subr.mxu0 %v8430_v59 }
 0x187   :  { %7120 = vmatprep.subr.mxu1 %v9947_v45  ;;  %7084 = vmatpush3.msra.mxu0 %v8430_v59 }
 0x188   :  { %7121 = vmatpush3.msra.mxu1 %v9947_v45  ;;  %7085 = vmatprep.subr.mxu0 %v8441_v12 }
 0x189   :  { %7122 = vmatprep.subr.mxu1 %v9948_v21  ;;  %7086 = vmatpush3.msra.mxu0 %v8441_v12 }
 0x18a   :  { %7123 = vmatpush3.msra.mxu1 %v9948_v21  ;;  %7087 = vmatprep.subr.mxu0 %v8456_v11 }
 0x18b   :  { %7124 = vmatprep.subr.mxu1 %v9949_v15  ;;  %7088 = vmatpush3.msra.mxu0 %v8456_v11 }
 0x18c   :  { %7125 = vmatpush3.msra.mxu1 %v9949_v15  ;;  %7089 = vmatprep.subr.mxu0 %v8473_v6 }
 0x18d   :  { %7164 = vmatprep.subr.mxu1 %v8230_v19  ;;  %7090 = vmatpush3.msra.mxu0 %v8473_v6 }
 0x18e   :  { %7129 = vmatprep.subr.mxu0 %v8244_v31 }
 0x1d4   :  { %v6876_v45 = vpop.f32.mrf.mxu1 }
 0x1d6   :  { %v852_v21 = vpop.f32.mrf.mxu1 }
 0x1dc   :  { %v6841_v41 = vpop.f32.mrf.mxu0 }
 0x1dd   :  { %v859_v27 = vadd.f32 %v6876_v45, %v6841_v41 }
 0x1de   :  { %v691_v9 = vpop.f32.mrf.mxu0 }
 0x1df   :  { %v853_v4 = vadd.f32 %v852_v21, %v691_v9 }
 0x1f5   :  { %v6946_v8 = vpop.f32.mrf.mxu1 }
 0x1f7   :  { %v1058_v58 = vpop.f32.mrf.mxu1 }
 0x1fd   :  { %v6911_v2 = vpop.f32.mrf.mxu0 }
 0x1fe   :  { %v970_v28 = vadd.f32 %v6911_v2, %v859_v27 }
 0x1ff   :  { %v962_v1 = vpop.f32.mrf.mxu0 }
 0x200   :  { %v963_v50 = vadd.f32 %v962_v1, %v853_v4  ;;  %v1067_v15 = vadd.f32 %v6946_v8, %v970_v28 }
 0x202   :  { %v1059_v54 = vadd.f32 %v1058_v58, %v963_v50 }
 0x217   :  { %v7016_v30 = vpop.f32.mrf.mxu1 }
 0x219   :  { %v1278_v13 = vpop.f32.mrf.mxu1 }
 0x21d   :  { %v7030_v33 = vpop.f32.mrf.mxu1 }
 0x21e   :  { %v6981_v10 = vpop.f32.mrf.mxu0 }
 0x21f   :  { %v1192_v7 = vadd.f32 %v6981_v10, %v1067_v15  ;;  %v1452_v9 = vpop.f32.mrf.mxu1 }
 0x220   :  { %v1185_v18 = vpop.f32.mrf.mxu0 }
 0x221   :  { %v8761_v5 = vadd.f32 %v7016_v30, %v1192_v7  ;;  %v1186_v41 = vadd.f32 %v1185_v18, %v1059_v54 }
 0x222   :  { %v7023_v45 = vpop.f32.mrf.mxu0 }
 0x223   :  { %v8763_v62 = vadd.f32 %v1278_v13, %v1186_v41  ;;  %v1459_v2 = vadd.f32 %v7030_v33, %v7023_v45 }
 0x224   :  { %v1361_v21 = vpop.f32.mrf.mxu0 }
 0x225   :  { %9950 = vst [vmem:[#allocation51_spill] sm:$0xff] %v8763_v62  ;;  %v1453_v1 = vadd.f32 %v1452_v9, %v1361_v21 }
 0x226   :  { %v7037_v27 = vpop.f32.mrf.mxu0 }
 0x227   :  { %v1542_v28 = vadd.f32 %v7037_v27, %v1459_v2  ;;  %v7044_v8 = vpop.f32.mrf.mxu1 }
 0x228   :  { %v1534_v58 = vpop.f32.mrf.mxu0 }
 0x229   :  { %v1625_v50 = vadd.f32 %v7044_v8, %v1542_v28  ;;  %v1535_v4 = vadd.f32 %v1534_v58, %v1453_v1  ;;  %v1616_v29 = vpop.f32.mrf.mxu1  ;;  %v8036_v1 = vld [vmem:[#allocation2 + $0x8] sm:$0xff]  ;;  %v8037_v8 = vld [vmem:[#allocation2] sm:$0xff] }
 0x22a   :  { %v2475_v28 = vmul.f32 %v8036_v1, %v8036_v1  ;;  %v2474_v58 = vmul.f32 %v8037_v8, %v8037_v8  ;;  %v9959_v1 = vld [vmem:[#allocation15_spill] sm:$0xff]  ;;  %v9961_v8 = vld [vmem:[#allocation21_spill] sm:$0xff] }
 0x22b   :  { %v1617_v10 = vadd.f32 %v1616_v29, %v1535_v4 }
 0x22c   :  { %v7051_v15 = vpop.f32.mrf.mxu0  ;;  %v8873_v4 = vand.u32 4294901760, %v2474_v58 }
 0x22d   :  { %v1708_v23 = vadd.f32 %v7051_v15, %v1625_v50  ;;  %v7058_v7 = vpop.f32.mrf.mxu1  ;;  %v8867_v50 = vand.u32 4294901760, %v2475_v28 }
 0x22e   :  { %v1701_v30 = vpop.f32.mrf.mxu0  ;;  %v2600_v15 = vsub.f32 %v2474_v58, %v8873_v4  ;;  %v9962_v58 = vld [vmem:[#allocation22_spill] sm:$0xff] }
 0x22f   :  { %v1787_v18 = vadd.f32 %v7058_v7, %v1708_v23  ;;  %v1702_v54 = vadd.f32 %v1701_v30, %v1617_v10  ;;  %v1780_v13 = vpop.f32.mrf.mxu1  ;;  %v2593_v10 = vsub.f32 %v2475_v28, %v8867_v50  ;;  %v9951_v30 = vld [vmem:[#allocation35_spill] sm:$0xff]  ;;  %v9960_v28 = vld [vmem:[#allocation16_spill] sm:$0xff] }
 0x231   :  { %v8765_v41 = vand.u32 4294901760, %v1787_v18  ;;  %v1781_v62 = vadd.f32 %v1780_v13, %v1702_v54  ;;  %v2594_v7 = vand.u32 4294901760, %v2593_v10  ;;  %v9952_v54 = vld [vmem:[#allocation36_spill] sm:$0xff] }
 0x233   :  { %v8768_v33 = vsub.f32 %v1787_v18, %v8765_v41  ;;  %v8770_v45 = vand.u32 4294901760, %v1781_v62  ;;  %v2601_v18 = vand.u32 4294901760, %v2600_v15  ;;  %v2595_v13 = vsub.f32 %v2593_v10, %v2594_v7 }
 0x235   :  { %v1883_v9 = vand.u32 4294901760, %v8768_v33  ;;  %v1872_v21 = vsub.f32 %v1781_v62, %v8770_v45  ;;  %7126 = vmatprep.mubr.f32.mxu1 %v8770_v45 }
 0x236   :  { %7127 = vmatmul.mubr.f32.vlgmr.msra.gmra.mxu1 %v8765_v41 }
 0x237   :  { %7165 = vmatpush3.msra.mxu1 %v8230_v19  ;;  %v1873_v23 = vand.u32 4294901760, %v1872_v21  ;;  %v1884_v29 = vsub.f32 %v8768_v33, %v1883_v9 }
 0x238   :  { %7166 = vmatprep.subr.mxu1 %v8237_v25 }
 0x239   :  { %7167 = vmatpush3.msra.mxu1 %v8237_v25  ;;  %7196 = vmatprep.mubr.f32.mxu1 %v1873_v23  ;;  %v1874_v2 = vsub.f32 %v1872_v21, %v1873_v23  ;;  %v1885_v27 = vand.u32 4294901760, %v1884_v29  ;;  %v9955_v23 = vld [vmem:[#allocation42_spill] sm:$0xff] }
 0x23a   :  { %7168 = vmatprep.subr.mxu1 %v8246_v32 }
 0x23b   :  { %7169 = vmatpush3.msra.mxu1 %v8246_v32  ;;  %v1875_v62 = vand.u32 4294901760, %v1874_v2  ;;  %v9956_v2 = vld [vmem:[#allocation44_spill] sm:$0xff] }
 0x23c   :  { %7170 = vmatprep.subr.mxu1 %v8254_v36 }
 0x23d   :  { %7171 = vmatpush3.msra.mxu1 %v8254_v36  ;;  %7091 = vmatprep.mubr.f32.mxu0 %v1875_v62  ;;  %v9957_v62 = vld [vmem:[#allocation45_spill] sm:$0xff] }
 0x23e   :  { %7172 = vmatprep.subr.mxu1 %v8263_v40  ;;  %7092 = vmatmul.mubr.f32.vlgmr.msra.gmra.mxu0 %v1885_v27  ;;  %v9958_v27 = vld [vmem:[#allocation48_spill] sm:$0xff] }
 0x23f   :  { %7130 = vmatpush3.msra.mxu0 %v8244_v31  ;;  %7173 = vmatpush3.msra.mxu1 %v8263_v40 }
 0x240   :  { %7131 = vmatprep.subr.mxu0 %v8252_v35  ;;  %7161 = vmatprep.mubr.f32.mxu0 %v1872_v21  ;;  %v2596_v21 = vand.u32 4294901760, %v2595_v13  ;;  %v9964_v13 = vld [vmem:[#allocation19_spill] sm:$0xff] }
 0x241   :  { %7174 = vmatprep.subr.mxu1 %v8273_v44  ;;  %7132 = vmatpush3.msra.mxu0 %v8252_v35 }
 0x242   :  { %7175 = vmatpush3.msra.mxu1 %v8273_v44  ;;  %7133 = vmatprep.subr.mxu0 %v8261_v39 }
 0x243   :  { %7176 = vmatprep.subr.mxu1 %v8287_v49  ;;  %7134 = vmatpush3.msra.mxu0 %v8261_v39 }
 0x244   :  { %7177 = vmatpush3.msra.mxu1 %v8287_v49  ;;  %7135 = vmatprep.subr.mxu0 %v8271_v43 }
 0x245   :  { %7178 = vmatprep.subr.mxu1 %v8299_v53  ;;  %7136 = vmatpush3.msra.mxu0 %v8271_v43 }
 0x246   :  { %7179 = vmatpush3.msra.mxu1 %v8299_v53  ;;  %7137 = vmatprep.subr.mxu0 %v8285_v48 }
 0x247   :  { %7180 = vmatprep.subr.mxu1 %v8388_v14  ;;  %7138 = vmatpush3.msra.mxu0 %v8285_v48 }
 0x248   :  { %7181 = vmatpush3.msra.mxu1 %v8388_v14  ;;  %7139 = vmatprep.subr.mxu0 %v8297_v52 }
 0x249   :  { %7182 = vmatprep.subr.mxu1 %v8393_v20  ;;  %7140 = vmatpush3.msra.mxu0 %v8297_v52 }
 0x24a   :  { %7183 = vmatpush3.msra.mxu1 %v8393_v20  ;;  %7141 = vmatprep.subr.mxu0 %v8311_v57 }
 0x24b   :  { %7184 = vmatprep.subr.mxu1 %v8403_v26  ;;  %7142 = vmatpush3.msra.mxu0 %v8311_v57 }
 0x24c   :  { %7185 = vmatpush3.msra.mxu1 %v8403_v26  ;;  %7143 = vmatprep.subr.mxu0 %v8325_v61 }
 0x24d   :  { %7186 = vmatprep.subr.mxu1 %v8415_v37  ;;  %7144 = vmatpush3.msra.mxu0 %v8325_v61 }
 0x24e   :  { %7187 = vmatpush3.msra.mxu1 %v8415_v37  ;;  %7145 = vmatprep.subr.mxu0 %v8391_v17 }
 0x24f   :  { %7188 = vmatprep.subr.mxu1 %v8430_v59  ;;  %7146 = vmatpush3.msra.mxu0 %v8391_v17 }
 0x250   :  { %7189 = vmatpush3.msra.mxu1 %v8430_v59  ;;  %7147 = vmatprep.subr.mxu0 %v8401_v24 }
 0x251   :  { %7190 = vmatprep.subr.mxu1 %v8441_v12  ;;  %7148 = vmatpush3.msra.mxu0 %v8401_v24 }
 0x252   :  { %7191 = vmatpush3.msra.mxu1 %v8441_v12  ;;  %7149 = vmatprep.subr.mxu0 %v8413_v34 }
 0x253   :  { %7192 = vmatprep.subr.mxu1 %v8456_v11  ;;  %7150 = vmatpush3.msra.mxu0 %v8413_v34 }
 0x254   :  { %7193 = vmatpush3.msra.mxu1 %v8456_v11  ;;  %7151 = vmatprep.subr.mxu0 %v8427_v55 }
 0x255   :  { %7194 = vmatprep.subr.mxu1 %v8473_v6  ;;  %7152 = vmatpush3.msra.mxu0 %v8427_v55 }
 0x256   :  { %7195 = vmatpush3.msra.mxu1 %v8473_v6  ;;  %7153 = vmatprep.subr.mxu0 %v8445_v16 }
 0x257   :  { %7197 = vmatmul.mubr.f32.vlgmr.msra.gmra.mxu1 %v1883_v9  ;;  %7234 = vmatprep.subr.mxu1 %v8230_v19  ;;  %v9954_v9 = vld [vmem:[#allocation40_spill] sm:$0xff] }
 0x258   :  { %7154 = vmatpush3.msra.mxu0 %v8445_v16  ;;  %7235 = vmatpush3.msra.mxu1 %v8230_v19 }
 0x259   :  { %7266 = vmatprep.mubr.f32.mxu1 %v8770_v45  ;;  %7155 = vmatprep.subr.mxu0 %v8454_v46 }
 0x25a   :  { %7236 = vmatprep.subr.mxu1 %v8237_v25  ;;  %7156 = vmatpush3.msra.mxu0 %v8454_v46 }
 0x25b   :  { %7237 = vmatpush3.msra.mxu1 %v8237_v25  ;;  %7157 = vmatprep.subr.mxu0 %v8471_v63 }
 0x25c   :  { %7238 = vmatprep.subr.mxu1 %v8246_v32  ;;  %7158 = vmatpush3.msra.mxu0 %v8471_v63 }
 0x25d   :  { %7239 = vmatpush3.msra.mxu1 %v8246_v32  ;;  %7159 = vmatprep.subr.mxu0 %v8487_v22 }
 0x25e   :  { %7240 = vmatprep.subr.mxu1 %v8254_v36  ;;  %7160 = vmatpush3.msra.mxu0 %v8487_v22 }
 0x25f   :  { %7241 = vmatpush3.msra.mxu1 %v8254_v36  ;;  %7162 = vmatmul.mubr.f32.vlgmr.msra.gmra.mxu0 %v8768_v33  ;;  %v9953_v33 = vld [vmem:[#allocation38_spill] sm:$0xff] }
 0x260   :  { %7199 = vmatprep.subr.mxu0 %v8258_v38  ;;  %7242 = vmatprep.subr.mxu1 %v8263_v40 }
 0x261   :  { %7200 = vmatpush3.msra.mxu0 %v8258_v38  ;;  %7231 = vmatprep.mubr.f32.mxu0 %v8770_v45  ;;  %v2602_v45 = vsub.f32 %v2600_v15, %v2601_v18 }
 0x262   :  { %7243 = vmatpush3.msra.mxu1 %v8263_v40  ;;  %7201 = vmatprep.subr.mxu0 %v8268_v42 }
 0x263   :  { %7244 = vmatprep.subr.mxu1 %v8273_v44  ;;  %7202 = vmatpush3.msra.mxu0 %v8268_v42  ;;  %v2603_v29 = vand.u32 4294901760, %v2602_v45  ;;  %v9965_v45 = vld [vmem:[#allocation18_spill] sm:$0xff] }
 0x264   :  { %7245 = vmatpush3.msra.mxu1 %v8273_v44  ;;  %7203 = vmatprep.subr.mxu0 %v8282_v47 }
 0x265   :  { %7246 = vmatprep.subr.mxu1 %v8287_v49  ;;  %7204 = vmatpush3.msra.mxu0 %v8282_v47 }
 0x266   :  { %7247 = vmatpush3.msra.mxu1 %v8287_v49  ;;  %7205 = vmatprep.subr.mxu0 %v8294_v51 }
 0x267   :  { %7248 = vmatprep.subr.mxu1 %v8299_v53  ;;  %7206 = vmatpush3.msra.mxu0 %v8294_v51 }
 0x268   :  { %7249 = vmatpush3.msra.mxu1 %v8299_v53  ;;  %7207 = vmatprep.subr.mxu0 %v8308_v56 }
 0x269   :  { %7250 = vmatprep.subr.mxu1 %v8388_v14  ;;  %7208 = vmatpush3.msra.mxu0 %v8308_v56 }
 0x26a   :  { %7251 = vmatpush3.msra.mxu1 %v8388_v14  ;;  %7209 = vmatprep.subr.mxu0 %v8322_v60 }
 0x26b   :  { %7252 = vmatprep.subr.mxu1 %v8393_v20  ;;  %7210 = vmatpush3.msra.mxu0 %v8322_v60 }
 0x26c   :  { %7253 = vmatpush3.msra.mxu1 %v8393_v20  ;;  %7211 = vmatprep.subr.mxu0 %v8336_v0 }
 0x26d   :  { %7254 = vmatprep.subr.mxu1 %v8403_v26  ;;  %7212 = vmatpush3.msra.mxu0 %v8336_v0 }
 0x26e   :  { %7255 = vmatpush3.msra.mxu1 %v8403_v26  ;;  %7213 = vmatprep.subr.mxu0 %v8347_v3 }
 0x26f   :  { %7256 = vmatprep.subr.mxu1 %v8415_v37  ;;  %7214 = vmatpush3.msra.mxu0 %v8347_v3 }
 0x270   :  { %7257 = vmatpush3.msra.mxu1 %v8415_v37  ;;  %7215 = vmatprep.subr.mxu0 %v9951_v30 }
 0x271   :  { %7258 = vmatprep.subr.mxu1 %v8430_v59  ;;  %7216 = vmatpush3.msra.mxu0 %v9951_v30 }
 0x272   :  { %7259 = vmatpush3.msra.mxu1 %v8430_v59  ;;  %7217 = vmatprep.subr.mxu0 %v9952_v54 }
 0x273   :  { %7260 = vmatprep.subr.mxu1 %v8441_v12  ;;  %7218 = vmatpush3.msra.mxu0 %v9952_v54 }
 0x274   :  { %7261 = vmatpush3.msra.mxu1 %v8441_v12  ;;  %7219 = vmatprep.subr.mxu0 %v9953_v33 }
 0x275   :  { %7262 = vmatprep.subr.mxu1 %v8456_v11  ;;  %7220 = vmatpush3.msra.mxu0 %v9953_v33  ;;  %v6055_v33 = vmul.f32 2.0, %v8761_v5 }
 0x276   :  { %7263 = vmatpush3.msra.mxu1 %v8456_v11  ;;  %7221 = vmatprep.subr.mxu0 %v9954_v9 }
 0x277   :  { %7264 = vmatprep.subr.mxu1 %v8473_v6  ;;  %7222 = vmatpush3.msra.mxu0 %v9954_v9 }
 0x278   :  { %7265 = vmatpush3.msra.mxu1 %v8473_v6  ;;  %7223 = vmatprep.subr.mxu0 %v9955_v23 }
 0x279   :  { %7267 = vmatmul.mubr.f32.vlgmr.msra.gmra.mxu1 %v8765_v41  ;;  %7224 = vmatpush3.msra.mxu0 %v9955_v23 }
 0x27a   :  { %7225 = vmatprep.subr.mxu0 %v9956_v2  ;;  %7276 = vmatprep.subr.mxu1 %v2596_v21 }
 0x27b   :  { %7226 = vmatpush3.msra.mxu0 %v9956_v2  ;;  %7277 = vmatpush3.msra.mxu1 %v2596_v21  ;;  %v9966_v21 = vld [vmem:[#allocation20_spill] sm:$0xff] }
 0x27c   :  { %7227 = vmatprep.subr.mxu0 %v9957_v62  ;;  %7278 = vmatprep.subr.mxu1 %v2603_v29 }
 0x27d   :  { %7228 = vmatpush3.msra.mxu0 %v9957_v62  ;;  %7279 = vmatpush3.msra.mxu1 %v2603_v29  ;;  %v9973_v29 = vld [vmem:[#allocation33_spill] sm:$0xff] }
 0x27e   :  { %7229 = vmatprep.subr.mxu0 %v9958_v27  ;;  %7280 = vmatprep.mubr.f32.mxu1 %v9959_v1 }
 0x27f   :  { %7230 = vmatpush3.msra.mxu0 %v9958_v27  ;;  %7281 = vmatmul.mubr.f32.vlgmr.msra.gmra.mxu1 %v9960_v28 }
 0x280   :  { %7232 = vmatmul.mubr.f32.vlgmr.msra.gmra.mxu0 %v8765_v41  ;;  %7269 = vmatprep.subr.mxu0 %v8867_v50  ;;  %v9963_v41 = vld [vmem:[#allocation17_spill] sm:$0xff] }
 0x281   :  { %7270 = vmatpush3.msra.mxu0 %v8867_v50  ;;  %7273 = vmatprep.mubr.f32.mxu0 %v9961_v8 }
 0x282   :  { %7271 = vmatprep.subr.mxu0 %v8873_v4  ;;  %7290 = vmatprep.subr.mxu1 %v8867_v50 }
 0x283   :  { %7272 = vmatpush3.msra.mxu0 %v8873_v4  ;;  %7291 = vmatpush3.msra.mxu1 %v8867_v50 }
 0x284   :  { %7274 = vmatmul.mubr.f32.vlgmr.msra.gmra.mxu0 %v9962_v58  ;;  %7283 = vmatprep.subr.mxu0 %v2593_v10 }
 0x285   :  { %7284 = vmatpush3.msra.mxu0 %v2593_v10  ;;  %7292 = vmatprep.subr.mxu1 %v8873_v4  ;;  %v9967_v10 = vld [vmem:[#allocation23_spill] sm:$0xff] }
 0x286   :  { %7285 = vmatprep.subr.mxu0 %v2600_v15  ;;  %7287 = vmatprep.mubr.f32.mxu0 %v9963_v41 }
 0x287   :  { %7286 = vmatpush3.msra.mxu0 %v2600_v15  ;;  %7293 = vmatpush3.msra.mxu1 %v8873_v4  ;;  %v9970_v15 = vld [vmem:[#allocation29_spill] sm:$0xff] }
 0x288   :  { %7294 = vmatprep.mubr.f32.mxu1 %v9964_v13  ;;  %7288 = vmatmul.mubr.f32.vlgmr.msra.gmra.mxu0 %v9965_v45 }
 0x289   :  { %7295 = vmatmul.mubr.f32.vlgmr.msra.gmra.mxu1 %v9966_v21  ;;  %7297 = vmatprep.subr.mxu0 %v2594_v7 }
 0x28a   :  { %7304 = vmatprep.subr.mxu1 %v8867_v50  ;;  %7298 = vmatpush3.msra.mxu0 %v2594_v7  ;;  %v9971_v7 = vld [vmem:[#allocation31_spill] sm:$0xff] }
 0x28b   :  { %7305 = vmatpush3.msra.mxu1 %v8867_v50  ;;  %7299 = vmatprep.subr.mxu0 %v2601_v18  ;;  %v9968_v50 = vld [vmem:[#allocation25_spill] sm:$0xff] }
 0x28c   :  { %7306 = vmatprep.subr.mxu1 %v8873_v4  ;;  %7300 = vmatpush3.msra.mxu0 %v2601_v18  ;;  %v9972_v18 = vld [vmem:[#allocation32_spill] sm:$0xff] }
 0x28d   :  { %7301 = vmatprep.mubr.f32.mxu0 %v9959_v1  ;;  %7307 = vmatpush3.msra.mxu1 %v8873_v4  ;;  %v9969_v4 = vld [vmem:[#allocation27_spill] sm:$0xff] }
 0x28e   :  { %7308 = vmatprep.mubr.f32.mxu1 %v9959_v1  ;;  %7302 = vmatmul.mubr.f32.vlgmr.msra.gmra.mxu0 %v9960_v28 }
 0x28f   :  { %7309 = vmatmul.mubr.f32.vlgmr.msra.gmra.mxu1 %v9960_v28  ;;  %7346 = vmatprep.subr.mxu1 %v9967_v10 }
 0x290   :  { %7347 = vmatpush3.msra.mxu1 %v9967_v10  ;;  %7311 = vmatprep.subr.mxu0 %v8230_v19 }
 0x291   :  { %7348 = vmatprep.subr.mxu1 %v9968_v50  ;;  %7312 = vmatpush3.msra.mxu0 %v8230_v19 }
 0x292   :  { %7349 = vmatpush3.msra.mxu1 %v9968_v50  ;;  %7313 = vmatprep.subr.mxu0 %v8237_v25 }
 0x293   :  { %7350 = vmatprep.subr.mxu1 %v9969_v4  ;;  %7314 = vmatpush3.msra.mxu0 %v8237_v25 }
 0x294   :  { %7351 = vmatpush3.msra.mxu1 %v9969_v4  ;;  %7315 = vmatprep.subr.mxu0 %v8246_v32 }
 0x295   :  { %7352 = vmatprep.subr.mxu1 %v9970_v15  ;;  %7316 = vmatpush3.msra.mxu0 %v8246_v32 }
 0x296   :  { %7353 = vmatpush3.msra.mxu1 %v9970_v15  ;;  %7317 = vmatprep.subr.mxu0 %v8254_v36  ;;  %v9974_v15 = vld [vmem:[#allocation34_spill] sm:$0xff] }
 0x297   :  { %7354 = vmatprep.subr.mxu1 %v9971_v7  ;;  %7318 = vmatpush3.msra.mxu0 %v8254_v36 }
 0x298   :  { %7355 = vmatpush3.msra.mxu1 %v9971_v7  ;;  %7319 = vmatprep.subr.mxu0 %v8263_v40  ;;  %v9975_v7 = vld [vmem:[#allocation37_spill] sm:$0xff] }
 0x299   :  { %7356 = vmatprep.subr.mxu1 %v9972_v18  ;;  %7320 = vmatpush3.msra.mxu0 %v8263_v40 }
 0x29a   :  { %7357 = vmatpush3.msra.mxu1 %v9972_v18  ;;  %7321 = vmatprep.subr.mxu0 %v8273_v44  ;;  %v9976_v18 = vld [vmem:[#allocation39_spill] sm:$0xff] }
 0x29b   :  { %7358 = vmatprep.subr.mxu1 %v9973_v29  ;;  %7322 = vmatpush3.msra.mxu0 %v8273_v44 }
 0x29c   :  { %7359 = vmatpush3.msra.mxu1 %v9973_v29  ;;  %7323 = vmatprep.subr.mxu0 %v8287_v49  ;;  %v9977_v29 = vld [vmem:[#allocation41_spill] sm:$0xff] }
 0x29d   :  { %7360 = vmatprep.subr.mxu1 %v9974_v15  ;;  %7324 = vmatpush3.msra.mxu0 %v8287_v49 }
 0x29e   :  { %7361 = vmatpush3.msra.mxu1 %v9974_v15  ;;  %7325 = vmatprep.subr.mxu0 %v8299_v53  ;;  %v9978_v15 = vld [vmem:[#allocation43_spill] sm:$0xff] }
 0x29f   :  { %7362 = vmatprep.subr.mxu1 %v9975_v7  ;;  %7326 = vmatpush3.msra.mxu0 %v8299_v53 }
 0x2a0   :  { %7363 = vmatpush3.msra.mxu1 %v9975_v7  ;;  %7327 = vmatprep.subr.mxu0 %v8388_v14  ;;  %v9979_v7 = vld [vmem:[#allocation46_spill] sm:$0xff] }
 0x2a1   :  { %7364 = vmatprep.subr.mxu1 %v9976_v18  ;;  %7328 = vmatpush3.msra.mxu0 %v8388_v14 }
 0x2a2   :  { %7365 = vmatpush3.msra.mxu1 %v9976_v18  ;;  %7329 = vmatprep.subr.mxu0 %v8393_v20  ;;  %v9980_v18 = vld [vmem:[#allocation47_spill] sm:$0xff] }
 0x2a3   :  { %7366 = vmatprep.subr.mxu1 %v9977_v29  ;;  %7330 = vmatpush3.msra.mxu0 %v8393_v20 }
 0x2a4   :  { %7367 = vmatpush3.msra.mxu1 %v9977_v29  ;;  %7331 = vmatprep.subr.mxu0 %v8403_v26  ;;  %v9981_v29 = vld [vmem:[#allocation49_spill] sm:$0xff] }
 0x2a5   :  { %7368 = vmatprep.subr.mxu1 %v9978_v15  ;;  %7332 = vmatpush3.msra.mxu0 %v8403_v26 }
 0x2a6   :  { %7369 = vmatpush3.msra.mxu1 %v9978_v15  ;;  %7333 = vmatprep.subr.mxu0 %v8415_v37  ;;  %v9982_v15 = vld [vmem:[#allocation50_spill] sm:$0xff] }
 0x2a7   :  { %7370 = vmatprep.subr.mxu1 %v9979_v7  ;;  %7334 = vmatpush3.msra.mxu0 %v8415_v37 }
 0x2a8   :  { %7371 = vmatpush3.msra.mxu1 %v9979_v7  ;;  %7335 = vmatprep.subr.mxu0 %v8430_v59 }
 0x2a9   :  { %7372 = vmatprep.subr.mxu1 %v9980_v18  ;;  %7336 = vmatpush3.msra.mxu0 %v8430_v59 }
 0x2aa   :  { %7373 = vmatpush3.msra.mxu1 %v9980_v18  ;;  %7337 = vmatprep.subr.mxu0 %v8441_v12 }
 0x2ab   :  { %7374 = vmatprep.subr.mxu1 %v9981_v29  ;;  %7338 = vmatpush3.msra.mxu0 %v8441_v12 }
 0x2ac   :  { %7375 = vmatpush3.msra.mxu1 %v9981_v29  ;;  %7339 = vmatprep.subr.mxu0 %v8456_v11 }
 0x2ad   :  { %7376 = vmatprep.subr.mxu1 %v9982_v15  ;;  %7340 = vmatpush3.msra.mxu0 %v8456_v11 }
 0x2ae   :  { %7377 = vmatpush3.msra.mxu1 %v9982_v15  ;;  %7341 = vmatprep.subr.mxu0 %v8473_v6 }
 0x2af   :  { %7416 = vmatprep.subr.mxu1 %v8230_v19  ;;  %7342 = vmatpush3.msra.mxu0 %v8473_v6 }
 0x2b0   :  { %7381 = vmatprep.subr.mxu0 %v8244_v31 }
 0x2f6   :  { %v7128_v18 = vpop.f32.mrf.mxu1 }
 0x2f8   :  { %v2038_v29 = vpop.f32.mrf.mxu1 }
 0x2fe   :  { %v7093_v7 = vpop.f32.mrf.mxu0 }
 0x2ff   :  { %v2045_v4 = vadd.f32 %v7128_v18, %v7093_v7 }
 0x300   :  { %v1877_v50 = vpop.f32.mrf.mxu0 }
 0x301   :  { %v2039_v10 = vadd.f32 %v2038_v29, %v1877_v50  ;;  %v9011_v50 = vmul.f32 %v8761_v5, %v8761_v5 }
 0x303   :  { %9983 = vst [vmem:[#allocation52_spill] sm:$0xff] %v9011_v50 }
 0x317   :  { %v7198_v21 = vpop.f32.mrf.mxu1 }
 0x319   :  { %v2244_v8 = vpop.f32.mrf.mxu1 }
 0x31f   :  { %v7163_v45 = vpop.f32.mrf.mxu0 }
 0x320   :  { %v2156_v13 = vadd.f32 %v7163_v45, %v2045_v4  ;;  %v9984_v45 = vld [vmem:[#allocation51_spill] sm:$0xff] }
 0x321   :  { %v2148_v41 = vpop.f32.mrf.mxu0 }
 0x322   :  { %v2149_v58 = vadd.f32 %v2148_v41, %v2039_v10  ;;  %v2253_v15 = vadd.f32 %v7198_v21, %v2156_v13  ;;  %v6054_v41 = vmul.f32 2.0, %v9984_v45 }
 0x324   :  { %v2245_v28 = vadd.f32 %v2244_v8, %v2149_v58 }
 0x339   :  { %v7268_v1 = vpop.f32.mrf.mxu1 }
 0x33b   :  { %v2464_v27 = vpop.f32.mrf.mxu1 }
 0x33f   :  { %v7282_v23 = vpop.f32.mrf.mxu1 }
 0x340   :  { %v7233_v62 = vpop.f32.mrf.mxu0 }
 0x341   :  { %v2378_v2 = vadd.f32 %v7233_v62, %v2253_v15  ;;  %v2640_v58 = vpop.f32.mrf.mxu1 }
 0x342   :  { %v2371_v9 = vpop.f32.mrf.mxu0 }
 0x343   :  { %v2471_v7 = vadd.f32 %v7268_v1, %v2378_v2  ;;  %v2372_v18 = vadd.f32 %v2371_v9, %v2245_v28 }
 0x344   :  { %v7275_v54 = vpop.f32.mrf.mxu0 }
 0x345   :  { %v9014_v13 = vmul.f32 %v6055_v33, %v2471_v7  ;;  %v2465_v8 = vadd.f32 %v2464_v27, %v2372_v18  ;;  %v9016_v21 = vmul.f32 %v2471_v7, %v2471_v7  ;;  %v9019_v10 = vmul.f32 %v2471_v7, %v8761_v5 }
 0x346   :  { %v2549_v62 = vpop.f32.mrf.mxu0  ;;  %v2647_v9 = vadd.f32 %v7282_v23, %v7275_v54  ;;  %v9029_v33 = vmul.f32 %v9984_v45, %v9984_v45 }
 0x347   :  { %9985 = vst [vmem:[#allocation51_spill] sm:$0xff] %v9014_v13  ;;  %9986 = vst [vmem:[#allocation53_spill] sm:$0xff] %v9016_v21  ;;  %v9021_v4 = vmul.f32 %v6054_v41, %v2465_v8  ;;  %v9025_v2 = vadd.f32 %v9016_v21, %v9011_v50  ;;  %v9031_v27 = vmul.f32 %v2465_v8, %v2465_v8 }
 0x348   :  { %9987 = vst [vmem:[#allocation54_spill] sm:$0xff] %v9019_v10  ;;  %v7289_v1 = vpop.f32.mrf.mxu0  ;;  %v9034_v28 = vmul.f32 %v2465_v8, %v9984_v45  ;;  %v2641_v15 = vadd.f32 %v2640_v58, %v2549_v62 }
 0x349   :  { %9988 = vst [vmem:[#allocation55_spill] sm:$0xff] %v9021_v4  ;;  %9989 = vst [vmem:[#allocation56_spill] sm:$0xff] %v9025_v2  ;;  %v2730_v5 = vadd.f32 %v7289_v1, %v2647_v9  ;;  %v7296_v29 = vpop.f32.mrf.mxu1  ;;  %v9038_v54 = vadd.f32 %v9031_v27, %v9029_v33 }
 0x34a   :  { %9990 = vst [vmem:[#allocation57_spill] sm:$0xff] %v9031_v27  ;;  %9991 = vst [vmem:[#allocation58_spill] sm:$0xff] %v9034_v28  ;;  %v2722_v7 = vpop.f32.mrf.mxu0  ;;  %v10001_v28 = vld [vmem:[#allocation15_spill] sm:$0xff]  ;;  %v10007_v27 = vld [vmem:[#allocation18_spill] sm:$0xff] }
 0x34b   :  { %9992 = vst [vmem:[#allocation59_spill] sm:$0xff] %v9038_v54  ;;  %v2813_v23 = vadd.f32 %v7296_v29, %v2730_v5  ;;  %v2723_v18 = vadd.f32 %v2722_v7, %v2641_v15  ;;  %v2804_v41 = vpop.f32.mrf.mxu1  ;;  %v9142_v5 = vld [vmem:[#allocation5] sm:$0xff] }
 0x34c   :  { %v3662_v29 = vmul.f32 %v9142_v5, %v9142_v5  ;;  %v10006_v54 = vld [vmem:[#allocation19_spill] sm:$0xff] }
 0x34d   :  { %v2805_v4 = vadd.f32 %v2804_v41, %v2723_v18 }
 0x34e   :  { %v7303_v13 = vpop.f32.mrf.mxu0 }
 0x34f   :  { %v2896_v10 = vadd.f32 %v7303_v13, %v2813_v23  ;;  %v7310_v2 = vpop.f32.mrf.mxu1  ;;  %v9156_v23 = vand.u32 4294901760, %v3662_v29 }
 0x350   :  { %v2889_v21 = vpop.f32.mrf.mxu0 }
 0x351   :  { %v2975_v50 = vadd.f32 %v7310_v2, %v2896_v10  ;;  %v2890_v30 = vadd.f32 %v2889_v21, %v2805_v4  ;;  %v2968_v45 = vpop.f32.mrf.mxu1  ;;  %v9134_v4 = vld [vmem:[#allocation5 + $0x8] sm:$0xff]  ;;  %v3788_v41 = vsub.f32 %v3662_v29, %v9156_v23  ;;  %v9999_v29 = vld [vmem:[#allocation45_spill] sm:$0xff] }
 0x352   :  { %v3663_v2 = vmul.f32 %v9134_v4, %v9134_v4 }
 0x353   :  { %v9040_v8 = vand.u32 4294901760, %v2975_v50  ;;  %v2969_v58 = vadd.f32 %v2968_v45, %v2890_v30 }
 0x354   :  { %v9150_v7 = vand.u32 4294901760, %v3663_v2 }
 0x355   :  { %v9043_v62 = vsub.f32 %v2975_v50, %v9040_v8  ;;  %v9045_v9 = vand.u32 4294901760, %v2969_v58 }
 0x356   :  { %v3781_v18 = vsub.f32 %v3663_v2, %v9150_v7  ;;  %v9998_v2 = vld [vmem:[#allocation44_spill] sm:$0xff] }
 0x357   :  { %v3071_v1 = vand.u32 4294901760, %v9043_v62  ;;  %v3060_v15 = vsub.f32 %v2969_v58, %v9045_v9  ;;  %7378 = vmatprep.mubr.f32.mxu1 %v9045_v9  ;;  %v9993_v58 = vld [vmem:[#allocation35_spill] sm:$0xff] }
 0x358   :  { %7379 = vmatmul.mubr.f32.vlgmr.msra.gmra.mxu1 %v9040_v8  ;;  %v3782_v45 = vand.u32 4294901760, %v3781_v18 }
 0x359   :  { %7417 = vmatpush3.msra.mxu1 %v8230_v19  ;;  %v3061_v13 = vand.u32 4294901760, %v3060_v15  ;;  %v3072_v30 = vsub.f32 %v9043_v62, %v3071_v1 }
 0x35a   :  { %7418 = vmatprep.subr.mxu1 %v8237_v25 }
 0x35b   :  { %7419 = vmatpush3.msra.mxu1 %v8237_v25  ;;  %7448 = vmatprep.mubr.f32.mxu1 %v3061_v13  ;;  %v3062_v50 = vsub.f32 %v3060_v15, %v3061_v13  ;;  %v3073_v10 = vand.u32 4294901760, %v3072_v30  ;;  %v9996_v30 = vld [vmem:[#allocation40_spill] sm:$0xff] }
 0x35c   :  { %7420 = vmatprep.subr.mxu1 %v8246_v32 }
 0x35d   :  { %7421 = vmatpush3.msra.mxu1 %v8246_v32  ;;  %v3063_v21 = vand.u32 4294901760, %v3062_v50 }
 0x35e   :  { %7422 = vmatprep.subr.mxu1 %v8254_v36 }
 0x35f   :  { %7423 = vmatpush3.msra.mxu1 %v8254_v36  ;;  %7343 = vmatprep.mubr.f32.mxu0 %v3063_v21  ;;  %v9997_v21 = vld [vmem:[#allocation42_spill] sm:$0xff] }
 0x360   :  { %7424 = vmatprep.subr.mxu1 %v8263_v40  ;;  %7344 = vmatmul.mubr.f32.vlgmr.msra.gmra.mxu0 %v3073_v10 }
 0x361   :  { %7382 = vmatpush3.msra.mxu0 %v8244_v31  ;;  %7425 = vmatpush3.msra.mxu1 %v8263_v40 }
 0x362   :  { %7383 = vmatprep.subr.mxu0 %v8252_v35  ;;  %7413 = vmatprep.mubr.f32.mxu0 %v3060_v15  ;;  %v9995_v15 = vld [vmem:[#allocation38_spill] sm:$0xff] }
 0x363   :  { %7426 = vmatprep.subr.mxu1 %v8273_v44  ;;  %7384 = vmatpush3.msra.mxu0 %v8252_v35 }
 0x364   :  { %7427 = vmatpush3.msra.mxu1 %v8273_v44  ;;  %7385 = vmatprep.subr.mxu0 %v8261_v39 }
 0x365   :  { %7428 = vmatprep.subr.mxu1 %v8287_v49  ;;  %7386 = vmatpush3.msra.mxu0 %v8261_v39 }
 0x366   :  { %7429 = vmatpush3.msra.mxu1 %v8287_v49  ;;  %7387 = vmatprep.subr.mxu0 %v8271_v43 }
 0x367   :  { %7430 = vmatprep.subr.mxu1 %v8299_v53  ;;  %7388 = vmatpush3.msra.mxu0 %v8271_v43 }
 0x368   :  { %7431 = vmatpush3.msra.mxu1 %v8299_v53  ;;  %7389 = vmatprep.subr.mxu0 %v8285_v48 }
 0x369   :  { %7432 = vmatprep.subr.mxu1 %v8388_v14  ;;  %7390 = vmatpush3.msra.mxu0 %v8285_v48 }
 0x36a   :  { %7433 = vmatpush3.msra.mxu1 %v8388_v14  ;;  %7391 = vmatprep.subr.mxu0 %v8297_v52 }
 0x36b   :  { %7434 = vmatprep.subr.mxu1 %v8393_v20  ;;  %7392 = vmatpush3.msra.mxu0 %v8297_v52 }
 0x36c   :  { %7435 = vmatpush3.msra.mxu1 %v8393_v20  ;;  %7393 = vmatprep.subr.mxu0 %v8311_v57 }
 0x36d   :  { %7436 = vmatprep.subr.mxu1 %v8403_v26  ;;  %7394 = vmatpush3.msra.mxu0 %v8311_v57 }
 0x36e   :  { %7437 = vmatpush3.msra.mxu1 %v8403_v26  ;;  %7395 = vmatprep.subr.mxu0 %v8325_v61 }
 0x36f   :  { %7438 = vmatprep.subr.mxu1 %v8415_v37  ;;  %7396 = vmatpush3.msra.mxu0 %v8325_v61 }
 0x370   :  { %7439 = vmatpush3.msra.mxu1 %v8415_v37  ;;  %7397 = vmatprep.subr.mxu0 %v8391_v17 }
 0x371   :  { %7440 = vmatprep.subr.mxu1 %v8430_v59  ;;  %7398 = vmatpush3.msra.mxu0 %v8391_v17 }
 0x372   :  { %7441 = vmatpush3.msra.mxu1 %v8430_v59  ;;  %7399 = vmatprep.subr.mxu0 %v8401_v24 }
 0x373   :  { %7442 = vmatprep.subr.mxu1 %v8441_v12  ;;  %7400 = vmatpush3.msra.mxu0 %v8401_v24 }
 0x374   :  { %7443 = vmatpush3.msra.mxu1 %v8441_v12  ;;  %7401 = vmatprep.subr.mxu0 %v8413_v34 }
 0x375   :  { %7444 = vmatprep.subr.mxu1 %v8456_v11  ;;  %7402 = vmatpush3.msra.mxu0 %v8413_v34 }
 0x376   :  { %7445 = vmatpush3.msra.mxu1 %v8456_v11  ;;  %7403 = vmatprep.subr.mxu0 %v8427_v55 }
 0x377   :  { %7446 = vmatprep.subr.mxu1 %v8473_v6  ;;  %7404 = vmatpush3.msra.mxu0 %v8427_v55 }
 0x378   :  { %7447 = vmatpush3.msra.mxu1 %v8473_v6  ;;  %7405 = vmatprep.subr.mxu0 %v8445_v16 }
 0x379   :  { %7449 = vmatmul.mubr.f32.vlgmr.msra.gmra.mxu1 %v3071_v1  ;;  %7486 = vmatprep.subr.mxu1 %v8230_v19  ;;  %v3783_v1 = vsub.f32 %v3781_v18, %v3782_v45 }
 0x37a   :  { %7406 = vmatpush3.msra.mxu0 %v8445_v16  ;;  %7487 = vmatpush3.msra.mxu1 %v8230_v19 }
 0x37b   :  { %7518 = vmatprep.mubr.f32.mxu1 %v9045_v9  ;;  %7407 = vmatprep.subr.mxu0 %v8454_v46  ;;  %v3784_v50 = vand.u32 4294901760, %v3783_v1  ;;  %v10000_v1 = vld [vmem:[#allocation48_spill] sm:$0xff] }
 0x37c   :  { %7488 = vmatprep.subr.mxu1 %v8237_v25  ;;  %7408 = vmatpush3.msra.mxu0 %v8454_v46 }
 0x37d   :  { %7489 = vmatpush3.msra.mxu1 %v8237_v25  ;;  %7409 = vmatprep.subr.mxu0 %v8471_v63 }
 0x37e   :  { %7490 = vmatprep.subr.mxu1 %v8246_v32  ;;  %7410 = vmatpush3.msra.mxu0 %v8471_v63 }
 0x37f   :  { %7491 = vmatpush3.msra.mxu1 %v8246_v32  ;;  %7411 = vmatprep.subr.mxu0 %v8487_v22 }
 0x380   :  { %7492 = vmatprep.subr.mxu1 %v8254_v36  ;;  %7412 = vmatpush3.msra.mxu0 %v8487_v22 }
 0x381   :  { %7493 = vmatpush3.msra.mxu1 %v8254_v36  ;;  %7414 = vmatmul.mubr.f32.vlgmr.msra.gmra.mxu0 %v9043_v62  ;;  %v3789_v62 = vand.u32 4294901760, %v3788_v41 }
 0x382   :  { %7451 = vmatprep.subr.mxu0 %v8258_v38  ;;  %7494 = vmatprep.subr.mxu1 %v8263_v40 }
 0x383   :  { %7452 = vmatpush3.msra.mxu0 %v8258_v38  ;;  %7483 = vmatprep.mubr.f32.mxu0 %v9045_v9  ;;  %v9994_v9 = vld [vmem:[#allocation36_spill] sm:$0xff]  ;;  %v3790_v13 = vsub.f32 %v3788_v41, %v3789_v62 }
 0x384   :  { %7495 = vmatpush3.msra.mxu1 %v8263_v40  ;;  %7453 = vmatprep.subr.mxu0 %v8268_v42 }
 0x385   :  { %7496 = vmatprep.subr.mxu1 %v8273_v44  ;;  %7454 = vmatpush3.msra.mxu0 %v8268_v42  ;;  %v3791_v10 = vand.u32 4294901760, %v3790_v13  ;;  %v10002_v13 = vld [vmem:[#allocation16_spill] sm:$0xff] }
 0x386   :  { %7497 = vmatpush3.msra.mxu1 %v8273_v44  ;;  %7455 = vmatprep.subr.mxu0 %v8282_v47 }
 0x387   :  { %7498 = vmatprep.subr.mxu1 %v8287_v49  ;;  %7456 = vmatpush3.msra.mxu0 %v8282_v47 }
 0x388   :  { %7499 = vmatpush3.msra.mxu1 %v8287_v49  ;;  %7457 = vmatprep.subr.mxu0 %v8294_v51 }
 0x389   :  { %7500 = vmatprep.subr.mxu1 %v8299_v53  ;;  %7458 = vmatpush3.msra.mxu0 %v8294_v51 }
 0x38a   :  { %7501 = vmatpush3.msra.mxu1 %v8299_v53  ;;  %7459 = vmatprep.subr.mxu0 %v8308_v56 }
 0x38b   :  { %7502 = vmatprep.subr.mxu1 %v8388_v14  ;;  %7460 = vmatpush3.msra.mxu0 %v8308_v56 }
 0x38c   :  { %7503 = vmatpush3.msra.mxu1 %v8388_v14  ;;  %7461 = vmatprep.subr.mxu0 %v8322_v60 }
 0x38d   :  { %7504 = vmatprep.subr.mxu1 %v8393_v20  ;;  %7462 = vmatpush3.msra.mxu0 %v8322_v60 }
 0x38e   :  { %7505 = vmatpush3.msra.mxu1 %v8393_v20  ;;  %7463 = vmatprep.subr.mxu0 %v8336_v0 }
 0x38f   :  { %7506 = vmatprep.subr.mxu1 %v8403_v26  ;;  %7464 = vmatpush3.msra.mxu0 %v8336_v0 }
 0x390   :  { %7507 = vmatpush3.msra.mxu1 %v8403_v26  ;;  %7465 = vmatprep.subr.mxu0 %v8347_v3 }
 0x391   :  { %7508 = vmatprep.subr.mxu1 %v8415_v37  ;;  %7466 = vmatpush3.msra.mxu0 %v8347_v3 }
 0x392   :  { %7509 = vmatpush3.msra.mxu1 %v8415_v37  ;;  %7467 = vmatprep.subr.mxu0 %v9993_v58 }
 0x393   :  { %7510 = vmatprep.subr.mxu1 %v8430_v59  ;;  %7468 = vmatpush3.msra.mxu0 %v9993_v58 }
 0x394   :  { %7511 = vmatpush3.msra.mxu1 %v8430_v59  ;;  %7469 = vmatprep.subr.mxu0 %v9994_v9 }
 0x395   :  { %7512 = vmatprep.subr.mxu1 %v8441_v12  ;;  %7470 = vmatpush3.msra.mxu0 %v9994_v9 }
 0x396   :  { %7513 = vmatpush3.msra.mxu1 %v8441_v12  ;;  %7471 = vmatprep.subr.mxu0 %v9995_v15 }
 0x397   :  { %7514 = vmatprep.subr.mxu1 %v8456_v11  ;;  %7472 = vmatpush3.msra.mxu0 %v9995_v15 }
 0x398   :  { %7515 = vmatpush3.msra.mxu1 %v8456_v11  ;;  %7473 = vmatprep.subr.mxu0 %v9996_v30 }
 0x399   :  { %7516 = vmatprep.subr.mxu1 %v8473_v6  ;;  %7474 = vmatpush3.msra.mxu0 %v9996_v30 }
 0x39a   :  { %7517 = vmatpush3.msra.mxu1 %v8473_v6  ;;  %7475 = vmatprep.subr.mxu0 %v9997_v21 }
 0x39b   :  { %7519 = vmatmul.mubr.f32.vlgmr.msra.gmra.mxu1 %v9040_v8  ;;  %7476 = vmatpush3.msra.mxu0 %v9997_v21 }
 0x39c   :  { %7477 = vmatprep.subr.mxu0 %v9998_v2  ;;  %7528 = vmatprep.subr.mxu1 %v3784_v50 }
 0x39d   :  { %7478 = vmatpush3.msra.mxu0 %v9998_v2  ;;  %7529 = vmatpush3.msra.mxu1 %v3784_v50  ;;  %v10003_v50 = vld [vmem:[#allocation21_spill] sm:$0xff] }
 0x39e   :  { %7479 = vmatprep.subr.mxu0 %v9999_v29  ;;  %7530 = vmatprep.subr.mxu1 %v3791_v10 }
 0x39f   :  { %7480 = vmatpush3.msra.mxu0 %v9999_v29  ;;  %7531 = vmatpush3.msra.mxu1 %v3791_v10  ;;  %v10004_v10 = vld [vmem:[#allocation22_spill] sm:$0xff] }
 0x3a0   :  { %7481 = vmatprep.subr.mxu0 %v10000_v1  ;;  %7532 = vmatprep.mubr.f32.mxu1 %v10001_v28 }
 0x3a1   :  { %7482 = vmatpush3.msra.mxu0 %v10000_v1  ;;  %7533 = vmatmul.mubr.f32.vlgmr.msra.gmra.mxu1 %v10002_v13 }
 0x3a2   :  { %7484 = vmatmul.mubr.f32.vlgmr.msra.gmra.mxu0 %v9040_v8  ;;  %7521 = vmatprep.subr.mxu0 %v9150_v7  ;;  %v10005_v8 = vld [vmem:[#allocation17_spill] sm:$0xff] }
 0x3a3   :  { %7522 = vmatpush3.msra.mxu0 %v9150_v7  ;;  %7525 = vmatprep.mubr.f32.mxu0 %v10003_v50  ;;  %v10008_v50 = vld [vmem:[#allocation20_spill] sm:$0xff] }
 0x3a4   :  { %7523 = vmatprep.subr.mxu0 %v9156_v23  ;;  %7542 = vmatprep.subr.mxu1 %v9150_v7 }
 0x3a5   :  { %7524 = vmatpush3.msra.mxu0 %v9156_v23  ;;  %7543 = vmatpush3.msra.mxu1 %v9150_v7 }
 0x3a6   :  { %7526 = vmatmul.mubr.f32.vlgmr.msra.gmra.mxu0 %v10004_v10  ;;  %7535 = vmatprep.subr.mxu0 %v3781_v18 }
 0x3a7   :  { %7536 = vmatpush3.msra.mxu0 %v3781_v18  ;;  %7544 = vmatprep.subr.mxu1 %v9156_v23  ;;  %v10009_v18 = vld [vmem:[#allocation23_spill] sm:$0xff] }
 0x3a8   :  { %7537 = vmatprep.subr.mxu0 %v3788_v41  ;;  %7539 = vmatprep.mubr.f32.mxu0 %v10005_v8 }
 0x3a9   :  { %7538 = vmatpush3.msra.mxu0 %v3788_v41  ;;  %7545 = vmatpush3.msra.mxu1 %v9156_v23  ;;  %v10012_v41 = vld [vmem:[#allocation29_spill] sm:$0xff] }
 0x3aa   :  { %7546 = vmatprep.mubr.f32.mxu1 %v10006_v54  ;;  %7540 = vmatmul.mubr.f32.vlgmr.msra.gmra.mxu0 %v10007_v27 }
 0x3ab   :  { %7547 = vmatmul.mubr.f32.vlgmr.msra.gmra.mxu1 %v10008_v50  ;;  %7549 = vmatprep.subr.mxu0 %v3782_v45 }
 0x3ac   :  { %7556 = vmatprep.subr.mxu1 %v9150_v7  ;;  %7550 = vmatpush3.msra.mxu0 %v3782_v45  ;;  %v10013_v45 = vld [vmem:[#allocation31_spill] sm:$0xff] }
 0x3ad   :  { %7557 = vmatpush3.msra.mxu1 %v9150_v7  ;;  %7551 = vmatprep.subr.mxu0 %v3789_v62  ;;  %v10010_v7 = vld [vmem:[#allocation25_spill] sm:$0xff] }
 0x3ae   :  { %7558 = vmatprep.subr.mxu1 %v9156_v23  ;;  %7552 = vmatpush3.msra.mxu0 %v3789_v62  ;;  %v10014_v62 = vld [vmem:[#allocation32_spill] sm:$0xff] }
 0x3af   :  { %7553 = vmatprep.mubr.f32.mxu0 %v10001_v28  ;;  %7559 = vmatpush3.msra.mxu1 %v9156_v23  ;;  %v10011_v23 = vld [vmem:[#allocation27_spill] sm:$0xff] }
 0x3b0   :  { %7560 = vmatprep.mubr.f32.mxu1 %v10001_v28  ;;  %7554 = vmatmul.mubr.f32.vlgmr.msra.gmra.mxu0 %v10002_v13 }
 0x3b1   :  { %7561 = vmatmul.mubr.f32.vlgmr.msra.gmra.mxu1 %v10002_v13  ;;  %7598 = vmatprep.subr.mxu1 %v10009_v18 }
 0x3b2   :  { %7599 = vmatpush3.msra.mxu1 %v10009_v18  ;;  %7563 = vmatprep.subr.mxu0 %v8230_v19 }
 0x3b3   :  { %7600 = vmatprep.subr.mxu1 %v10010_v7  ;;  %7564 = vmatpush3.msra.mxu0 %v8230_v19 }
 0x3b4   :  { %7601 = vmatpush3.msra.mxu1 %v10010_v7  ;;  %7565 = vmatprep.subr.mxu0 %v8237_v25 }
 0x3b5   :  { %7602 = vmatprep.subr.mxu1 %v10011_v23  ;;  %7566 = vmatpush3.msra.mxu0 %v8237_v25 }
 0x3b6   :  { %7603 = vmatpush3.msra.mxu1 %v10011_v23  ;;  %7567 = vmatprep.subr.mxu0 %v8246_v32  ;;  %v10015_v23 = vld [vmem:[#allocation33_spill] sm:$0xff] }
 0x3b7   :  { %7604 = vmatprep.subr.mxu1 %v10012_v41  ;;  %7568 = vmatpush3.msra.mxu0 %v8246_v32 }
 0x3b8   :  { %7605 = vmatpush3.msra.mxu1 %v10012_v41  ;;  %7569 = vmatprep.subr.mxu0 %v8254_v36  ;;  %v10016_v41 = vld [vmem:[#allocation34_spill] sm:$0xff] }
 0x3b9   :  { %7606 = vmatprep.subr.mxu1 %v10013_v45  ;;  %7570 = vmatpush3.msra.mxu0 %v8254_v36 }
 0x3ba   :  { %7607 = vmatpush3.msra.mxu1 %v10013_v45  ;;  %7571 = vmatprep.subr.mxu0 %v8263_v40  ;;  %v10017_v45 = vld [vmem:[#allocation37_spill] sm:$0xff] }
 0x3bb   :  { %7608 = vmatprep.subr.mxu1 %v10014_v62  ;;  %7572 = vmatpush3.msra.mxu0 %v8263_v40 }
 0x3bc   :  { %7609 = vmatpush3.msra.mxu1 %v10014_v62  ;;  %7573 = vmatprep.subr.mxu0 %v8273_v44  ;;  %v10018_v62 = vld [vmem:[#allocation39_spill] sm:$0xff] }
 0x3bd   :  { %7610 = vmatprep.subr.mxu1 %v10015_v23  ;;  %7574 = vmatpush3.msra.mxu0 %v8273_v44 }
 0x3be   :  { %7611 = vmatpush3.msra.mxu1 %v10015_v23  ;;  %7575 = vmatprep.subr.mxu0 %v8287_v49  ;;  %v10019_v23 = vld [vmem:[#allocation41_spill] sm:$0xff] }
 0x3bf   :  { %7612 = vmatprep.subr.mxu1 %v10016_v41  ;;  %7576 = vmatpush3.msra.mxu0 %v8287_v49 }
 0x3c0   :  { %7613 = vmatpush3.msra.mxu1 %v10016_v41  ;;  %7577 = vmatprep.subr.mxu0 %v8299_v53  ;;  %v10020_v41 = vld [vmem:[#allocation43_spill] sm:$0xff] }
 0x3c1   :  { %7614 = vmatprep.subr.mxu1 %v10017_v45  ;;  %7578 = vmatpush3.msra.mxu0 %v8299_v53 }
 0x3c2   :  { %7615 = vmatpush3.msra.mxu1 %v10017_v45  ;;  %7579 = vmatprep.subr.mxu0 %v8388_v14  ;;  %v10021_v45 = vld [vmem:[#allocation46_spill] sm:$0xff] }
 0x3c3   :  { %7616 = vmatprep.subr.mxu1 %v10018_v62  ;;  %7580 = vmatpush3.msra.mxu0 %v8388_v14 }
 0x3c4   :  { %7617 = vmatpush3.msra.mxu1 %v10018_v62  ;;  %7581 = vmatprep.subr.mxu0 %v8393_v20  ;;  %v10022_v62 = vld [vmem:[#allocation47_spill] sm:$0xff] }
 0x3c5   :  { %7618 = vmatprep.subr.mxu1 %v10019_v23  ;;  %7582 = vmatpush3.msra.mxu0 %v8393_v20 }
 0x3c6   :  { %7619 = vmatpush3.msra.mxu1 %v10019_v23  ;;  %7583 = vmatprep.subr.mxu0 %v8403_v26  ;;  %v10023_v23 = vld [vmem:[#allocation49_spill] sm:$0xff] }
 0x3c7   :  { %7620 = vmatprep.subr.mxu1 %v10020_v41  ;;  %7584 = vmatpush3.msra.mxu0 %v8403_v26 }
 0x3c8   :  { %7621 = vmatpush3.msra.mxu1 %v10020_v41  ;;  %7585 = vmatprep.subr.mxu0 %v8415_v37  ;;  %v10024_v41 = vld [vmem:[#allocation50_spill] sm:$0xff] }
 0x3c9   :  { %7622 = vmatprep.subr.mxu1 %v10021_v45  ;;  %7586 = vmatpush3.msra.mxu0 %v8415_v37 }
 0x3ca   :  { %7623 = vmatpush3.msra.mxu1 %v10021_v45  ;;  %7587 = vmatprep.subr.mxu0 %v8430_v59 }
 0x3cb   :  { %7624 = vmatprep.subr.mxu1 %v10022_v62  ;;  %7588 = vmatpush3.msra.mxu0 %v8430_v59 }
 0x3cc   :  { %7625 = vmatpush3.msra.mxu1 %v10022_v62  ;;  %7589 = vmatprep.subr.mxu0 %v8441_v12 }
 0x3cd   :  { %7626 = vmatprep.subr.mxu1 %v10023_v23  ;;  %7590 = vmatpush3.msra.mxu0 %v8441_v12 }
 0x3ce   :  { %7627 = vmatpush3.msra.mxu1 %v10023_v23  ;;  %7591 = vmatprep.subr.mxu0 %v8456_v11 }
 0x3cf   :  { %7628 = vmatprep.subr.mxu1 %v10024_v41  ;;  %7592 = vmatpush3.msra.mxu0 %v8456_v11 }
 0x3d0   :  { %7629 = vmatpush3.msra.mxu1 %v10024_v41  ;;  %7593 = vmatprep.subr.mxu0 %v8473_v6 }
 0x3d1   :  { %7668 = vmatprep.subr.mxu1 %v8230_v19  ;;  %7594 = vmatpush3.msra.mxu0 %v8473_v6 }
 0x3d2   :  { %7633 = vmatprep.subr.mxu0 %v8244_v31 }
 0x418   :  { %v7380_v62 = vpop.f32.mrf.mxu1 }
 0x41a   :  { %v3226_v23 = vpop.f32.mrf.mxu1 }
 0x420   :  { %v7345_v45 = vpop.f32.mrf.mxu0 }
 0x421   :  { %v3233_v7 = vadd.f32 %v7380_v62, %v7345_v45 }
 0x422   :  { %v3065_v18 = vpop.f32.mrf.mxu0 }
 0x423   :  { %v3227_v50 = vadd.f32 %v3226_v23, %v3065_v18 }
 0x439   :  { %v7450_v54 = vpop.f32.mrf.mxu1 }
 0x43b   :  { %v3432_v28 = vpop.f32.mrf.mxu1 }
 0x441   :  { %v7415_v27 = vpop.f32.mrf.mxu0 }
 0x442   :  { %v3344_v8 = vadd.f32 %v7415_v27, %v3233_v7 }
 0x443   :  { %v3336_v10 = vpop.f32.mrf.mxu0 }
 0x444   :  { %v3337_v13 = vadd.f32 %v3336_v10, %v3227_v50  ;;  %v3441_v41 = vadd.f32 %v7450_v54, %v3344_v8 }
 0x446   :  { %v3433_v1 = vadd.f32 %v3432_v28, %v3337_v13 }
 0x45b   :  { %v7520_v29 = vpop.f32.mrf.mxu1 }
 0x45d   :  { %v3652_v2 = vpop.f32.mrf.mxu1 }
 0x461   :  { %v7534_v15 = vpop.f32.mrf.mxu1 }
 0x462   :  { %v7485_v21 = vpop.f32.mrf.mxu0 }
 0x463   :  { %v3566_v30 = vadd.f32 %v7485_v21, %v3441_v41  ;;  %v3828_v27 = vpop.f32.mrf.mxu1 }
 0x464   :  { %v3559_v9 = vpop.f32.mrf.mxu0 }
 0x465   :  { %v9291_v58 = vadd.f32 %v7520_v29, %v3566_v30  ;;  %v3560_v45 = vadd.f32 %v3559_v9, %v3433_v1 }
 0x466   :  { %v7527_v62 = vpop.f32.mrf.mxu0 }
 0x467   :  { %10025 = vst [vmem:[#allocation60_spill] sm:$0xff] %v9291_v58  ;;  %v9295_v23 = vadd.f32 %v3652_v2, %v3560_v45  ;;  %v3835_v54 = vadd.f32 %v7534_v15, %v7527_v62 }
 0x468   :  { %v3737_v50 = vpop.f32.mrf.mxu0 }
 0x469   :  { %v3829_v10 = vadd.f32 %v3828_v27, %v3737_v50 }
 0x46a   :  { %v7541_v13 = vpop.f32.mrf.mxu0 }
 0x46b   :  { %v3918_v21 = vadd.f32 %v7541_v13, %v3835_v54  ;;  %v7548_v8 = vpop.f32.mrf.mxu1  ;;  %v8040_v54 = vld [vmem:[#allocation2 + $0x8] sm:$0xff] }
 0x46c   :  { %v3910_v7 = vpop.f32.mrf.mxu0  ;;  %v4851_v13 = vmul.f32 %v8040_v54, %v9134_v4  ;;  %v10037_v54 = vld [vmem:[#allocation48_spill] sm:$0xff] }
 0x46d   :  { %v4001_v30 = vadd.f32 %v7548_v8, %v3918_v21  ;;  %v3911_v29 = vadd.f32 %v3910_v7, %v3829_v10  ;;  %v3992_v9 = vpop.f32.mrf.mxu1  ;;  %v8041_v10 = vld [vmem:[#allocation2] sm:$0xff] }
 0x46e   :  { %v4850_v21 = vmul.f32 %v8041_v10, %v9142_v5  ;;  %v9403_v4 = vand.u32 4294901760, %v4851_v13  ;;  %v10027_v5 = vld [vmem:[#allocation26_spill] sm:$0xff]  ;;  %v10039_v10 = vld [vmem:[#allocation16_spill] sm:$0xff] }
 0x46f   :  { %v3993_v1 = vadd.f32 %v3992_v9, %v3911_v29  ;;  %v10029_v9 = vld [vmem:[#allocation30_spill] sm:$0xff] }
 0x470   :  { %v7555_v41 = vpop.f32.mrf.mxu0  ;;  %v9409_v8 = vand.u32 4294901760, %v4850_v21  ;;  %v4969_v7 = vsub.f32 %v4851_v13, %v9403_v4  ;;  %v10038_v13 = vld [vmem:[#allocation15_spill] sm:$0xff] }
 0x471   :  { %v4084_v0 = vadd.f32 %v7555_v41, %v4001_v30  ;;  %v7562_v18 = vpop.f32.mrf.mxu1  ;;  %v10028_v30 = vld [vmem:[#allocation28_spill] sm:$0xff]  ;;  %v10030_v41 = vld [vmem:[#allocation35_spill] sm:$0xff] }
 0x472   :  { %v4077_v2 = vpop.f32.mrf.mxu0  ;;  %v4976_v29 = vsub.f32 %v4850_v21, %v9409_v8  ;;  %v10040_v21 = vld [vmem:[#allocation21_spill] sm:$0xff] }
 0x473   :  { %v4163_v45 = vadd.f32 %v7562_v18, %v4084_v0  ;;  %v4078_v3 = vadd.f32 %v4077_v2, %v3993_v1  ;;  %v4156_v58 = vpop.f32.mrf.mxu1  ;;  %v4970_v1 = vand.u32 4294901760, %v4969_v7 }
 0x474   :  { %v4977_v2 = vand.u32 4294901760, %v4976_v29 }
 0x475   :  { %v9299_v60 = vand.u32 4294901760, %v4163_v45  ;;  %v4157_v28 = vadd.f32 %v4156_v58, %v4078_v3 }
 0x477   :  { %v9302_v15 = vsub.f32 %v4163_v45, %v9299_v60  ;;  %v9304_v62 = vand.u32 4294901760, %v4157_v28  ;;  %v10031_v45 = vld [vmem:[#allocation36_spill] sm:$0xff] }
 0x479   :  { %v4259_v27 = vand.u32 4294901760, %v9302_v15  ;;  %v4248_v50 = vsub.f32 %v4157_v28, %v9304_v62  ;;  %7630 = vmatprep.mubr.f32.mxu1 %v9304_v62 }
 0x47a   :  { %7631 = vmatmul.mubr.f32.vlgmr.msra.gmra.mxu1 %v9299_v60 }
 0x47b   :  { %7669 = vmatpush3.msra.mxu1 %v8230_v19  ;;  %v4249_v0 = vand.u32 4294901760, %v4248_v50  ;;  %v4260_v3 = vsub.f32 %v9302_v15, %v4259_v27 }
 0x47c   :  { %7670 = vmatprep.subr.mxu1 %v8237_v25 }
 0x47d   :  { %7671 = vmatpush3.msra.mxu1 %v8237_v25  ;;  %7700 = vmatprep.mubr.f32.mxu1 %v4249_v0  ;;  %v4250_v58 = vsub.f32 %v4248_v50, %v4249_v0  ;;  %v4261_v28 = vand.u32 4294901760, %v4260_v3  ;;  %v10034_v3 = vld [vmem:[#allocation42_spill] sm:$0xff] }
 0x47e   :  { %7672 = vmatprep.subr.mxu1 %v8246_v32 }
 0x47f   :  { %7673 = vmatpush3.msra.mxu1 %v8246_v32  ;;  %v4251_v18 = vand.u32 4294901760, %v4250_v58 }
 0x480   :  { %7674 = vmatprep.subr.mxu1 %v8254_v36 }
 0x481   :  { %7675 = vmatpush3.msra.mxu1 %v8254_v36  ;;  %7595 = vmatprep.mubr.f32.mxu0 %v4251_v18  ;;  %v10035_v18 = vld [vmem:[#allocation44_spill] sm:$0xff] }
 0x482   :  { %7676 = vmatprep.subr.mxu1 %v8263_v40  ;;  %7596 = vmatmul.mubr.f32.vlgmr.msra.gmra.mxu0 %v4261_v28  ;;  %v10036_v28 = vld [vmem:[#allocation45_spill] sm:$0xff] }
 0x483   :  { %7634 = vmatpush3.msra.mxu0 %v8244_v31  ;;  %7677 = vmatpush3.msra.mxu1 %v8263_v40 }
 0x484   :  { %7635 = vmatprep.subr.mxu0 %v8252_v35  ;;  %7665 = vmatprep.mubr.f32.mxu0 %v4248_v50  ;;  %v10033_v50 = vld [vmem:[#allocation40_spill] sm:$0xff] }
 0x485   :  { %7678 = vmatprep.subr.mxu1 %v8273_v44  ;;  %7636 = vmatpush3.msra.mxu0 %v8252_v35 }
 0x486   :  { %7679 = vmatpush3.msra.mxu1 %v8273_v44  ;;  %7637 = vmatprep.subr.mxu0 %v8261_v39 }
 0x487   :  { %7680 = vmatprep.subr.mxu1 %v8287_v49  ;;  %7638 = vmatpush3.msra.mxu0 %v8261_v39 }
 0x488   :  { %7681 = vmatpush3.msra.mxu1 %v8287_v49  ;;  %7639 = vmatprep.subr.mxu0 %v8271_v43 }
 0x489   :  { %7682 = vmatprep.subr.mxu1 %v8299_v53  ;;  %7640 = vmatpush3.msra.mxu0 %v8271_v43 }
 0x48a   :  { %7683 = vmatpush3.msra.mxu1 %v8299_v53  ;;  %7641 = vmatprep.subr.mxu0 %v8285_v48 }
 0x48b   :  { %7684 = vmatprep.subr.mxu1 %v8388_v14  ;;  %7642 = vmatpush3.msra.mxu0 %v8285_v48 }
 0x48c   :  { %7685 = vmatpush3.msra.mxu1 %v8388_v14  ;;  %7643 = vmatprep.subr.mxu0 %v8297_v52 }
 0x48d   :  { %7686 = vmatprep.subr.mxu1 %v8393_v20  ;;  %7644 = vmatpush3.msra.mxu0 %v8297_v52 }
 0x48e   :  { %7687 = vmatpush3.msra.mxu1 %v8393_v20  ;;  %7645 = vmatprep.subr.mxu0 %v8311_v57 }
 0x48f   :  { %7688 = vmatprep.subr.mxu1 %v8403_v26  ;;  %7646 = vmatpush3.msra.mxu0 %v8311_v57 }
 0x490   :  { %7689 = vmatpush3.msra.mxu1 %v8403_v26  ;;  %7647 = vmatprep.subr.mxu0 %v8325_v61 }
 0x491   :  { %7690 = vmatprep.subr.mxu1 %v8415_v37  ;;  %7648 = vmatpush3.msra.mxu0 %v8325_v61 }
 0x492   :  { %7691 = vmatpush3.msra.mxu1 %v8415_v37  ;;  %7649 = vmatprep.subr.mxu0 %v8391_v17 }
 0x493   :  { %7692 = vmatprep.subr.mxu1 %v8430_v59  ;;  %7650 = vmatpush3.msra.mxu0 %v8391_v17 }
 0x494   :  { %7693 = vmatpush3.msra.mxu1 %v8430_v59  ;;  %7651 = vmatprep.subr.mxu0 %v8401_v24 }
 0x495   :  { %7694 = vmatprep.subr.mxu1 %v8441_v12  ;;  %7652 = vmatpush3.msra.mxu0 %v8401_v24 }
 0x496   :  { %7695 = vmatpush3.msra.mxu1 %v8441_v12  ;;  %7653 = vmatprep.subr.mxu0 %v8413_v34 }
 0x497   :  { %7696 = vmatprep.subr.mxu1 %v8456_v11  ;;  %7654 = vmatpush3.msra.mxu0 %v8413_v34 }
 0x498   :  { %7697 = vmatpush3.msra.mxu1 %v8456_v11  ;;  %7655 = vmatprep.subr.mxu0 %v8427_v55 }
 0x499   :  { %7698 = vmatprep.subr.mxu1 %v8473_v6  ;;  %7656 = vmatpush3.msra.mxu0 %v8427_v55 }
 0x49a   :  { %7699 = vmatpush3.msra.mxu1 %v8473_v6  ;;  %7657 = vmatprep.subr.mxu0 %v8445_v16 }
 0x49b   :  { %7701 = vmatmul.mubr.f32.vlgmr.msra.gmra.mxu1 %v4259_v27  ;;  %7738 = vmatprep.subr.mxu1 %v8230_v19  ;;  %v4978_v27 = vsub.f32 %v4976_v29, %v4977_v2 }
 0x49c   :  { %7658 = vmatpush3.msra.mxu0 %v8445_v16  ;;  %7739 = vmatpush3.msra.mxu1 %v8230_v19 }
 0x49d   :  { %7770 = vmatprep.mubr.f32.mxu1 %v9304_v62  ;;  %7659 = vmatprep.subr.mxu0 %v8454_v46  ;;  %v4979_v58 = vand.u32 4294901760, %v4978_v27  ;;  %v10042_v27 = vld [vmem:[#allocation17_spill] sm:$0xff] }
 0x49e   :  { %7740 = vmatprep.subr.mxu1 %v8237_v25  ;;  %7660 = vmatpush3.msra.mxu0 %v8454_v46 }
 0x49f   :  { %7741 = vmatpush3.msra.mxu1 %v8237_v25  ;;  %7661 = vmatprep.subr.mxu0 %v8471_v63 }
 0x4a0   :  { %7742 = vmatprep.subr.mxu1 %v8246_v32  ;;  %7662 = vmatpush3.msra.mxu0 %v8471_v63 }
 0x4a1   :  { %7743 = vmatpush3.msra.mxu1 %v8246_v32  ;;  %7663 = vmatprep.subr.mxu0 %v8487_v22 }
 0x4a2   :  { %7744 = vmatprep.subr.mxu1 %v8254_v36  ;;  %7664 = vmatpush3.msra.mxu0 %v8487_v22 }
 0x4a3   :  { %7745 = vmatpush3.msra.mxu1 %v8254_v36  ;;  %7666 = vmatmul.mubr.f32.vlgmr.msra.gmra.mxu0 %v9302_v15  ;;  %v4971_v15 = vsub.f32 %v4969_v7, %v4970_v1 }
 0x4a4   :  { %7703 = vmatprep.subr.mxu0 %v8258_v38  ;;  %7746 = vmatprep.subr.mxu1 %v8263_v40 }
 0x4a5   :  { %7704 = vmatpush3.msra.mxu0 %v8258_v38  ;;  %7735 = vmatprep.mubr.f32.mxu0 %v9304_v62  ;;  %v10032_v62 = vld [vmem:[#allocation38_spill] sm:$0xff]  ;;  %v4972_v0 = vand.u32 4294901760, %v4971_v15 }
 0x4a6   :  { %7747 = vmatpush3.msra.mxu1 %v8263_v40  ;;  %7705 = vmatprep.subr.mxu0 %v8268_v42  ;;  %v10041_v15 = vld [vmem:[#allocation22_spill] sm:$0xff] }
 0x4a7   :  { %7748 = vmatprep.subr.mxu1 %v8273_v44  ;;  %7706 = vmatpush3.msra.mxu0 %v8268_v42 }
 0x4a8   :  { %7749 = vmatpush3.msra.mxu1 %v8273_v44  ;;  %7707 = vmatprep.subr.mxu0 %v8282_v47 }
 0x4a9   :  { %7750 = vmatprep.subr.mxu1 %v8287_v49  ;;  %7708 = vmatpush3.msra.mxu0 %v8282_v47 }
 0x4aa   :  { %7751 = vmatpush3.msra.mxu1 %v8287_v49  ;;  %7709 = vmatprep.subr.mxu0 %v8294_v51 }
 0x4ab   :  { %7752 = vmatprep.subr.mxu1 %v8299_v53  ;;  %7710 = vmatpush3.msra.mxu0 %v8294_v51 }
 0x4ac   :  { %7753 = vmatpush3.msra.mxu1 %v8299_v53  ;;  %7711 = vmatprep.subr.mxu0 %v8308_v56 }
 0x4ad   :  { %7754 = vmatprep.subr.mxu1 %v8388_v14  ;;  %7712 = vmatpush3.msra.mxu0 %v8308_v56 }
 0x4ae   :  { %7755 = vmatpush3.msra.mxu1 %v8388_v14  ;;  %7713 = vmatprep.subr.mxu0 %v10027_v5 }
 0x4af   :  { %7756 = vmatprep.subr.mxu1 %v8393_v20  ;;  %7714 = vmatpush3.msra.mxu0 %v10027_v5 }
 0x4b0   :  { %7757 = vmatpush3.msra.mxu1 %v8393_v20  ;;  %7715 = vmatprep.subr.mxu0 %v10028_v30 }
 0x4b1   :  { %7758 = vmatprep.subr.mxu1 %v8403_v26  ;;  %7716 = vmatpush3.msra.mxu0 %v10028_v30 }
 0x4b2   :  { %7759 = vmatpush3.msra.mxu1 %v8403_v26  ;;  %7717 = vmatprep.subr.mxu0 %v10029_v9 }
 0x4b3   :  { %7760 = vmatprep.subr.mxu1 %v8415_v37  ;;  %7718 = vmatpush3.msra.mxu0 %v10029_v9 }
 0x4b4   :  { %7761 = vmatpush3.msra.mxu1 %v8415_v37  ;;  %7719 = vmatprep.subr.mxu0 %v10030_v41 }
 0x4b5   :  { %7762 = vmatprep.subr.mxu1 %v8430_v59  ;;  %7720 = vmatpush3.msra.mxu0 %v10030_v41 }
 0x4b6   :  { %7763 = vmatpush3.msra.mxu1 %v8430_v59  ;;  %7721 = vmatprep.subr.mxu0 %v10031_v45 }
 0x4b7   :  { %7764 = vmatprep.subr.mxu1 %v8441_v12  ;;  %7722 = vmatpush3.msra.mxu0 %v10031_v45 }
 0x4b8   :  { %7765 = vmatpush3.msra.mxu1 %v8441_v12  ;;  %7723 = vmatprep.subr.mxu0 %v10032_v62 }
 0x4b9   :  { %7766 = vmatprep.subr.mxu1 %v8456_v11  ;;  %7724 = vmatpush3.msra.mxu0 %v10032_v62 }
 0x4ba   :  { %7767 = vmatpush3.msra.mxu1 %v8456_v11  ;;  %7725 = vmatprep.subr.mxu0 %v10033_v50 }
 0x4bb   :  { %7768 = vmatprep.subr.mxu1 %v8473_v6  ;;  %7726 = vmatpush3.msra.mxu0 %v10033_v50 }
 0x4bc   :  { %7769 = vmatpush3.msra.mxu1 %v8473_v6  ;;  %7727 = vmatprep.subr.mxu0 %v10034_v3 }
 0x4bd   :  { %7771 = vmatmul.mubr.f32.vlgmr.msra.gmra.mxu1 %v9299_v60  ;;  %7728 = vmatpush3.msra.mxu0 %v10034_v3 }
 0x4be   :  { %7729 = vmatprep.subr.mxu0 %v10035_v18  ;;  %7780 = vmatprep.subr.mxu1 %v4972_v0 }
 0x4bf   :  { %7730 = vmatpush3.msra.mxu0 %v10035_v18  ;;  %7781 = vmatpush3.msra.mxu1 %v4972_v0  ;;  %v10044_v0 = vld [vmem:[#allocation19_spill] sm:$0xff] }
 0x4c0   :  { %7731 = vmatprep.subr.mxu0 %v10036_v28  ;;  %7782 = vmatprep.subr.mxu1 %v4979_v58 }
 0x4c1   :  { %7732 = vmatpush3.msra.mxu0 %v10036_v28  ;;  %7783 = vmatpush3.msra.mxu1 %v4979_v58  ;;  %v10045_v58 = vld [vmem:[#allocation20_spill] sm:$0xff] }
 0x4c2   :  { %7733 = vmatprep.subr.mxu0 %v10037_v54  ;;  %7784 = vmatprep.mubr.f32.mxu1 %v10038_v13 }
 0x4c3   :  { %7734 = vmatpush3.msra.mxu0 %v10037_v54  ;;  %7785 = vmatmul.mubr.f32.vlgmr.msra.gmra.mxu1 %v10039_v10 }
 0x4c4   :  { %7736 = vmatmul.mubr.f32.vlgmr.msra.gmra.mxu0 %v9299_v60  ;;  %7773 = vmatprep.subr.mxu0 %v9403_v4  ;;  %v10043_v60 = vld [vmem:[#allocation18_spill] sm:$0xff] }
 0x4c5   :  { %7774 = vmatpush3.msra.mxu0 %v9403_v4  ;;  %7777 = vmatprep.mubr.f32.mxu0 %v10040_v21  ;;  %v10054_v21 = vld [vmem:[#allocation37_spill] sm:$0xff] }
 0x4c6   :  { %7775 = vmatprep.subr.mxu0 %v9409_v8  ;;  %7794 = vmatprep.subr.mxu1 %v9403_v4 }
 0x4c7   :  { %7776 = vmatpush3.msra.mxu0 %v9409_v8  ;;  %7795 = vmatpush3.msra.mxu1 %v9403_v4 }
 0x4c8   :  { %7778 = vmatmul.mubr.f32.vlgmr.msra.gmra.mxu0 %v10041_v15  ;;  %7787 = vmatprep.subr.mxu0 %v4969_v7  ;;  %v10055_v15 = vld [vmem:[#allocation39_spill] sm:$0xff] }
 0x4c9   :  { %7788 = vmatpush3.msra.mxu0 %v4969_v7  ;;  %7791 = vmatprep.mubr.f32.mxu0 %v10042_v27  ;;  %v10046_v7 = vld [vmem:[#allocation23_spill] sm:$0xff]  ;;  %v10056_v27 = vld [vmem:[#allocation41_spill] sm:$0xff] }
 0x4ca   :  { %7789 = vmatprep.subr.mxu0 %v4976_v29  ;;  %7796 = vmatprep.subr.mxu1 %v9409_v8 }
 0x4cb   :  { %7790 = vmatpush3.msra.mxu0 %v4976_v29  ;;  %7797 = vmatpush3.msra.mxu1 %v9409_v8  ;;  %v10048_v29 = vld [vmem:[#allocation27_spill] sm:$0xff] }
 0x4cc   :  { %7792 = vmatmul.mubr.f32.vlgmr.msra.gmra.mxu0 %v10043_v60  ;;  %7798 = vmatprep.mubr.f32.mxu1 %v10044_v0  ;;  %v10057_v60 = vld [vmem:[#allocation43_spill] sm:$0xff]  ;;  %v10058_v0 = vld [vmem:[#allocation46_spill] sm:$0xff] }
 0x4cd   :  { %7801 = vmatprep.subr.mxu0 %v4970_v1  ;;  %7799 = vmatmul.mubr.f32.vlgmr.msra.gmra.mxu1 %v10045_v58  ;;  %v10059_v58 = vld [vmem:[#allocation47_spill] sm:$0xff] }
 0x4ce   :  { %7802 = vmatpush3.msra.mxu0 %v4970_v1  ;;  %7808 = vmatprep.subr.mxu1 %v9403_v4  ;;  %v10050_v1 = vld [vmem:[#allocation31_spill] sm:$0xff] }
 0x4cf   :  { %7803 = vmatprep.subr.mxu0 %v4977_v2  ;;  %7809 = vmatpush3.msra.mxu1 %v9403_v4  ;;  %v10047_v4 = vld [vmem:[#allocation25_spill] sm:$0xff] }
 0x4d0   :  { %7804 = vmatpush3.msra.mxu0 %v4977_v2  ;;  %7805 = vmatprep.mubr.f32.mxu0 %v10038_v13  ;;  %v10051_v2 = vld [vmem:[#allocation32_spill] sm:$0xff] }
 0x4d1   :  { %7810 = vmatprep.subr.mxu1 %v9409_v8  ;;  %7806 = vmatmul.mubr.f32.vlgmr.msra.gmra.mxu0 %v10039_v10 }
 0x4d2   :  { %7811 = vmatpush3.msra.mxu1 %v9409_v8  ;;  %7812 = vmatprep.mubr.f32.mxu1 %v10038_v13  ;;  %v10049_v8 = vld [vmem:[#allocation29_spill] sm:$0xff] }
 0x4d3   :  { %7813 = vmatmul.mubr.f32.vlgmr.msra.gmra.mxu1 %v10039_v10  ;;  %7850 = vmatprep.subr.mxu1 %v10046_v7  ;;  %v10052_v13 = vld [vmem:[#allocation33_spill] sm:$0xff]  ;;  %v10053_v10 = vld [vmem:[#allocation34_spill] sm:$0xff] }
 0x4d4   :  { %7851 = vmatpush3.msra.mxu1 %v10046_v7  ;;  %7815 = vmatprep.subr.mxu0 %v8230_v19  ;;  %v10060_v7 = vld [vmem:[#allocation49_spill] sm:$0xff] }
 0x4d5   :  { %7852 = vmatprep.subr.mxu1 %v10047_v4  ;;  %7816 = vmatpush3.msra.mxu0 %v8230_v19 }
 0x4d6   :  { %7853 = vmatpush3.msra.mxu1 %v10047_v4  ;;  %7817 = vmatprep.subr.mxu0 %v8237_v25  ;;  %v10061_v4 = vld [vmem:[#allocation50_spill] sm:$0xff] }
 0x4d7   :  { %7854 = vmatprep.subr.mxu1 %v10048_v29  ;;  %7818 = vmatpush3.msra.mxu0 %v8237_v25 }
 0x4d8   :  { %7855 = vmatpush3.msra.mxu1 %v10048_v29  ;;  %7819 = vmatprep.subr.mxu0 %v8246_v32 }
 0x4d9   :  { %7856 = vmatprep.subr.mxu1 %v10049_v8  ;;  %7820 = vmatpush3.msra.mxu0 %v8246_v32 }
 0x4da   :  { %7857 = vmatpush3.msra.mxu1 %v10049_v8  ;;  %7821 = vmatprep.subr.mxu0 %v8254_v36 }
 0x4db   :  { %7858 = vmatprep.subr.mxu1 %v10050_v1  ;;  %7822 = vmatpush3.msra.mxu0 %v8254_v36 }
 0x4dc   :  { %7859 = vmatpush3.msra.mxu1 %v10050_v1  ;;  %7823 = vmatprep.subr.mxu0 %v8263_v40 }
 0x4dd   :  { %7860 = vmatprep.subr.mxu1 %v10051_v2  ;;  %7824 = vmatpush3.msra.mxu0 %v8263_v40 }
 0x4de   :  { %7861 = vmatpush3.msra.mxu1 %v10051_v2  ;;  %7825 = vmatprep.subr.mxu0 %v8273_v44 }
 0x4df   :  { %7862 = vmatprep.subr.mxu1 %v10052_v13  ;;  %7826 = vmatpush3.msra.mxu0 %v8273_v44 }
 0x4e0   :  { %7863 = vmatpush3.msra.mxu1 %v10052_v13  ;;  %7827 = vmatprep.subr.mxu0 %v8287_v49 }
 0x4e1   :  { %7864 = vmatprep.subr.mxu1 %v10053_v10  ;;  %7828 = vmatpush3.msra.mxu0 %v8287_v49 }
 0x4e2   :  { %7865 = vmatpush3.msra.mxu1 %v10053_v10  ;;  %7829 = vmatprep.subr.mxu0 %v8299_v53 }
 0x4e3   :  { %7866 = vmatprep.subr.mxu1 %v10054_v21  ;;  %7830 = vmatpush3.msra.mxu0 %v8299_v53 }
 0x4e4   :  { %7867 = vmatpush3.msra.mxu1 %v10054_v21  ;;  %7831 = vmatprep.subr.mxu0 %v8388_v14 }
 0x4e5   :  { %7868 = vmatprep.subr.mxu1 %v10055_v15  ;;  %7832 = vmatpush3.msra.mxu0 %v8388_v14 }
 0x4e6   :  { %7869 = vmatpush3.msra.mxu1 %v10055_v15  ;;  %7833 = vmatprep.subr.mxu0 %v8393_v20 }
 0x4e7   :  { %7870 = vmatprep.subr.mxu1 %v10056_v27  ;;  %7834 = vmatpush3.msra.mxu0 %v8393_v20 }
 0x4e8   :  { %7871 = vmatpush3.msra.mxu1 %v10056_v27  ;;  %7835 = vmatprep.subr.mxu0 %v8403_v26 }
 0x4e9   :  { %7872 = vmatprep.subr.mxu1 %v10057_v60  ;;  %7836 = vmatpush3.msra.mxu0 %v8403_v26 }
 0x4ea   :  { %7873 = vmatpush3.msra.mxu1 %v10057_v60  ;;  %7837 = vmatprep.subr.mxu0 %v8415_v37 }
 0x4eb   :  { %7874 = vmatprep.subr.mxu1 %v10058_v0  ;;  %7838 = vmatpush3.msra.mxu0 %v8415_v37 }
 0x4ec   :  { %7875 = vmatpush3.msra.mxu1 %v10058_v0  ;;  %7839 = vmatprep.subr.mxu0 %v8430_v59 }
 0x4ed   :  { %7876 = vmatprep.subr.mxu1 %v10059_v58  ;;  %7840 = vmatpush3.msra.mxu0 %v8430_v59 }
 0x4ee   :  { %7877 = vmatpush3.msra.mxu1 %v10059_v58  ;;  %7841 = vmatprep.subr.mxu0 %v8441_v12 }
 0x4ef   :  { %7878 = vmatprep.subr.mxu1 %v10060_v7  ;;  %7842 = vmatpush3.msra.mxu0 %v8441_v12 }
 0x4f0   :  { %7879 = vmatpush3.msra.mxu1 %v10060_v7  ;;  %7843 = vmatprep.subr.mxu0 %v8456_v11 }
 0x4f1   :  { %7880 = vmatprep.subr.mxu1 %v10061_v4  ;;  %7844 = vmatpush3.msra.mxu0 %v8456_v11 }
 0x4f2   :  { %7881 = vmatpush3.msra.mxu1 %v10061_v4  ;;  %7845 = vmatprep.subr.mxu0 %v8473_v6 }
 0x4f3   :  { %7920 = vmatprep.subr.mxu1 %v8230_v19  ;;  %7846 = vmatpush3.msra.mxu0 %v8473_v6 }
 0x4f4   :  { %7885 = vmatprep.subr.mxu0 %v8244_v31 }
 0x53a   :  { %v7632_v29 = vpop.f32.mrf.mxu1 }
 0x53c   :  { %v4414_v2 = vpop.f32.mrf.mxu1 }
 0x542   :  { %v7597_v8 = vpop.f32.mrf.mxu0 }
 0x543   :  { %v4421_v1 = vadd.f32 %v7632_v29, %v7597_v8  ;;  %v10062_v8 = vld [vmem:[#allocation53_spill] sm:$0xff] }
 0x544   :  { %v4253_v13 = vpop.f32.mrf.mxu0 }
 0x545   :  { %v4415_v10 = vadd.f32 %v4414_v2, %v4253_v13 }
 0x55b   :  { %v7702_v21 = vpop.f32.mrf.mxu1 }
 0x55d   :  { %v4620_v7 = vpop.f32.mrf.mxu1 }
 0x563   :  { %v7667_v15 = vpop.f32.mrf.mxu0 }
 0x564   :  { %v4532_v27 = vadd.f32 %v7667_v15, %v4421_v1  ;;  %v10063_v1 = vld [vmem:[#allocation60_spill] sm:$0xff] }
 0x565   :  { %v4524_v60 = vpop.f32.mrf.mxu0  ;;  %v10064_v15 = vld [vmem:[#allocation52_spill] sm:$0xff] }
 0x566   :  { %v4525_v0 = vadd.f32 %v4524_v60, %v4415_v10  ;;  %v4629_v58 = vadd.f32 %v7702_v21, %v4532_v27  ;;  %v10065_v10 = vsub.f32 %v10063_v1, %v10064_v15  ;;  %v10066_v60 = vld [vmem:[#allocation57_spill] sm:$0xff] }
 0x568   :  { %v4621_v4 = vadd.f32 %v4620_v7, %v4525_v0  ;;  %v6043_v21 = vmax.f32 %v10065_v10, 1e-06 }
 0x57d   :  { %v7772_v54 = vpop.f32.mrf.mxu1 }
 0x57f   :  { %v4840_v28 = vpop.f32.mrf.mxu1 }
 0x583   :  { %v7786_v50 = vpop.f32.mrf.mxu1 }
 0x584   :  { %v7737_v18 = vpop.f32.mrf.mxu0 }
 0x585   :  { %v4754_v3 = vadd.f32 %v7737_v18, %v4629_v58  ;;  %v5016_v13 = vpop.f32.mrf.mxu1  ;;  %v10067_v18 = vsub.f32 %v9295_v23, %v9029_v33 }
 0x586   :  { %v4747_v62 = vpop.f32.mrf.mxu0 }
 0x587   :  { %v4847_v45 = vadd.f32 %v7772_v54, %v4754_v3  ;;  %v4748_v41 = vadd.f32 %v4747_v62, %v4621_v4  ;;  %v6042_v58 = vmax.f32 %v10067_v18, 1e-06 }
 0x588   :  { %v7779_v29 = vpop.f32.mrf.mxu0 }
 0x589   :  { %v6047_v9 = vsub.f32 %v4847_v45, %v10062_v8  ;;  %v4841_v2 = vadd.f32 %v4840_v28, %v4748_v41  ;;  %v5023_v7 = vadd.f32 %v7786_v50, %v7779_v29  ;;  %v10068_v28 = vld [vmem:[#allocation56_spill] sm:$0xff]  ;;  %v10069_v50 = vld [vmem:[#allocation59_spill] sm:$0xff] }
 0x58a   :  { %v4925_v30 = vpop.f32.mrf.mxu0  ;;  %v6069_v8 = vadd.f32 0.0001, %v10068_v28  ;;  %v6068_v29 = vadd.f32 0.0001, %v10069_v50 }
 0x58b   :  { %v6049_v27 = vmax.f32 %v6047_v9, 1e-06  ;;  %v6046_v0 = vsub.f32 %v4841_v2, %v10066_v60  ;;  %v5017_v4 = vadd.f32 %v5016_v13, %v4925_v30 }
 0x58c   :  { %v7793_v3 = vpop.f32.mrf.mxu0 }
 0x58d   :  { %v6071_v62 = vadd.f32 %v6049_v27, %v6043_v21  ;;  %v6048_v54 = vmax.f32 %v6046_v0, 1e-06  ;;  %v5106_v45 = vadd.f32 %v7793_v3, %v5023_v7  ;;  %v7800_v41 = vpop.f32.mrf.mxu1 }
 0x58e   :  { %v5098_v5 = vpop.f32.mrf.mxu0 }
 0x58f   :  { %v6073_v56 = vadd.f32 0.0009, %v6071_v62  ;;  %v6070_v1 = vadd.f32 %v6048_v54, %v6042_v58  ;;  %v5189_v15 = vadd.f32 %v7800_v41, %v5106_v45  ;;  %v5099_v9 = vadd.f32 %v5098_v5, %v5017_v4  ;;  %v5180_v10 = vpop.f32.mrf.mxu1 }
 0x591   :  { %v9553_v2 = vmul.f32 %v6073_v56, %v6069_v8  ;;  %v6072_v33 = vadd.f32 0.0009, %v6070_v1  ;;  %v5181_v23 = vadd.f32 %v5180_v10, %v5099_v9  ;;  %v7807_v60 = vpop.f32.mrf.mxu0  ;;  %v10084_v10 = vld [vmem:[#allocation51_spill] sm:$0xff] }
 0x592   :  { %v5272_v21 = vadd.f32 %v7807_v60, %v5189_v15  ;;  %v10083_v15 = vld [vmem:[#allocation58_spill] sm:$0xff]  ;;  %v6059_v50 = vadd.f32 0.0001, %v10084_v10 }
 0x593   :  { %v9556_v27 = vmul.f32 %v6072_v33, %v6068_v29  ;;  %v7814_v30 = vpop.f32.mrf.mxu1  ;;  %v5265_v13 = vpop.f32.mrf.mxu0  ;;  %8032 = vrcp.f32 %v9553_v2  ;;  %v10085_v33 = vld [vmem:[#allocation55_spill] sm:$0xff] }
 0x594   :  { %v5351_v0 = vadd.f32 %v7814_v30, %v5272_v21  ;;  %v5266_v7 = vadd.f32 %v5265_v13, %v5181_v23  ;;  %v6058_v23 = vadd.f32 0.0001, %v10085_v33 }
 0x595   :  { %v5344_v18 = vpop.f32.mrf.mxu1  ;;  %8034 = vrcp.f32 %v9556_v27 }
 0x596   :  { %v9558_v3 = vand.u32 4294901760, %v5351_v0  ;;  %v5345_v58 = vadd.f32 %v5344_v18, %v5266_v7 }
 0x598   :  { %v9561_v5 = vsub.f32 %v5351_v0, %v9558_v3  ;;  %v9563_v56 = vand.u32 4294901760, %v5345_v58 }
 0x59a   :  { %v5447_v62 = vand.u32 4294901760, %v9561_v5  ;;  %v5436_v54 = vsub.f32 %v5345_v58, %v9563_v56  ;;  %7882 = vmatprep.mubr.f32.mxu1 %v9563_v56 }
 0x59b   :  { %7883 = vmatmul.mubr.f32.vlgmr.msra.gmra.mxu1 %v9558_v3 }
 0x59c   :  { %7921 = vmatpush3.msra.mxu1 %v8230_v19  ;;  %v5437_v4 = vand.u32 4294901760, %v5436_v54  ;;  %v5448_v45 = vsub.f32 %v9561_v5, %v5447_v62 }
 0x59d   :  { %7922 = vmatprep.subr.mxu1 %v8237_v25 }
 0x59e   :  { %7923 = vmatpush3.msra.mxu1 %v8237_v25  ;;  %7952 = vmatprep.mubr.f32.mxu1 %v5437_v4  ;;  %v5438_v41 = vsub.f32 %v5436_v54, %v5437_v4  ;;  %v5449_v8 = vand.u32 4294901760, %v5448_v45 }
 0x59f   :  { %7924 = vmatprep.subr.mxu1 %v8246_v32 }
 0x5a0   :  { %7925 = vmatpush3.msra.mxu1 %v8246_v32  ;;  %v5439_v28 = vand.u32 4294901760, %v5438_v41  ;;  %v8033_v27 = vpop.eup %8032 }
 0x5a1   :  { %7926 = vmatprep.subr.mxu1 %v8254_v36 }
 0x5a2   :  { %7927 = vmatpush3.msra.mxu1 %v8254_v36  ;;  %7847 = vmatprep.mubr.f32.mxu0 %v5439_v28  ;;  %v8035_v0 = vpop.eup %8034 }
 0x5a3   :  { %7928 = vmatprep.subr.mxu1 %v8263_v40  ;;  %7848 = vmatmul.mubr.f32.vlgmr.msra.gmra.mxu0 %v5449_v8 }
 0x5a4   :  { %7886 = vmatpush3.msra.mxu0 %v8244_v31  ;;  %7929 = vmatpush3.msra.mxu1 %v8263_v40  ;;  %v10072_v31 = vld [vmem:[#allocation28_spill] sm:$0xff] }
 0x5a5   :  { %7887 = vmatprep.subr.mxu0 %v8252_v35  ;;  %7917 = vmatprep.mubr.f32.mxu0 %v5436_v54 }
 0x5a6   :  { %7930 = vmatprep.subr.mxu1 %v8273_v44  ;;  %7888 = vmatpush3.msra.mxu0 %v8252_v35  ;;  %v10074_v35 = vld [vmem:[#allocation35_spill] sm:$0xff] }
 0x5a7   :  { %7931 = vmatpush3.msra.mxu1 %v8273_v44  ;;  %7889 = vmatprep.subr.mxu0 %v8261_v39 }
 0x5a8   :  { %7932 = vmatprep.subr.mxu1 %v8287_v49  ;;  %7890 = vmatpush3.msra.mxu0 %v8261_v39  ;;  %v10077_v39 = vld [vmem:[#allocation40_spill] sm:$0xff] }
 0x5a9   :  { %7933 = vmatpush3.msra.mxu1 %v8287_v49  ;;  %7891 = vmatprep.subr.mxu0 %v8271_v43 }
 0x5aa   :  { %7934 = vmatprep.subr.mxu1 %v8299_v53  ;;  %7892 = vmatpush3.msra.mxu0 %v8271_v43  ;;  %v10080_v43 = vld [vmem:[#allocation45_spill] sm:$0xff] }
 0x5ab   :  { %7935 = vmatpush3.msra.mxu1 %v8299_v53  ;;  %7893 = vmatprep.subr.mxu0 %v8285_v48 }
 0x5ac   :  { %7936 = vmatprep.subr.mxu1 %v8388_v14  ;;  %7894 = vmatpush3.msra.mxu0 %v8285_v48 }
 0x5ad   :  { %7937 = vmatpush3.msra.mxu1 %v8388_v14  ;;  %7895 = vmatprep.subr.mxu0 %v8297_v52 }
 0x5ae   :  { %7938 = vmatprep.subr.mxu1 %v8393_v20  ;;  %7896 = vmatpush3.msra.mxu0 %v8297_v52 }
 0x5af   :  { %7939 = vmatpush3.msra.mxu1 %v8393_v20  ;;  %7897 = vmatprep.subr.mxu0 %v8311_v57 }
 0x5b0   :  { %7940 = vmatprep.subr.mxu1 %v8403_v26  ;;  %7898 = vmatpush3.msra.mxu0 %v8311_v57 }
 0x5b1   :  { %7941 = vmatpush3.msra.mxu1 %v8403_v26  ;;  %7899 = vmatprep.subr.mxu0 %v8325_v61 }
 0x5b2   :  { %7942 = vmatprep.subr.mxu1 %v8415_v37  ;;  %7900 = vmatpush3.msra.mxu0 %v8325_v61 }
 0x5b3   :  { %7943 = vmatpush3.msra.mxu1 %v8415_v37  ;;  %7901 = vmatprep.subr.mxu0 %v8391_v17 }
 0x5b4   :  { %7944 = vmatprep.subr.mxu1 %v8430_v59  ;;  %7902 = vmatpush3.msra.mxu0 %v8391_v17 }
 0x5b5   :  { %7945 = vmatpush3.msra.mxu1 %v8430_v59  ;;  %7903 = vmatprep.subr.mxu0 %v8401_v24 }
 0x5b6   :  { %7946 = vmatprep.subr.mxu1 %v8441_v12  ;;  %7904 = vmatpush3.msra.mxu0 %v8401_v24 }
 0x5b7   :  { %7947 = vmatpush3.msra.mxu1 %v8441_v12  ;;  %7905 = vmatprep.subr.mxu0 %v8413_v34 }
 0x5b8   :  { %7948 = vmatprep.subr.mxu1 %v8456_v11  ;;  %7906 = vmatpush3.msra.mxu0 %v8413_v34 }
 0x5b9   :  { %7949 = vmatpush3.msra.mxu1 %v8456_v11  ;;  %7907 = vmatprep.subr.mxu0 %v8427_v55 }
 0x5ba   :  { %7950 = vmatprep.subr.mxu1 %v8473_v6  ;;  %7908 = vmatpush3.msra.mxu0 %v8427_v55 }
 0x5bb   :  { %7951 = vmatpush3.msra.mxu1 %v8473_v6  ;;  %7909 = vmatprep.subr.mxu0 %v8445_v16 }
 0x5bc   :  { %7953 = vmatmul.mubr.f32.vlgmr.msra.gmra.mxu1 %v5447_v62  ;;  %7990 = vmatprep.subr.mxu1 %v8230_v19 }
 0x5bd   :  { %7910 = vmatpush3.msra.mxu0 %v8445_v16  ;;  %7991 = vmatpush3.msra.mxu1 %v8230_v19  ;;  %v10070_v19 = vld [vmem:[#allocation24_spill] sm:$0xff] }
 0x5be   :  { %8022 = vmatprep.mubr.f32.mxu1 %v9563_v56  ;;  %7911 = vmatprep.subr.mxu0 %v8454_v46 }
 0x5bf   :  { %7992 = vmatprep.subr.mxu1 %v8237_v25  ;;  %7912 = vmatpush3.msra.mxu0 %v8454_v46  ;;  %v10082_v46 = vld [vmem:[#allocation54_spill] sm:$0xff] }
 0x5c0   :  { %7993 = vmatpush3.msra.mxu1 %v8237_v25  ;;  %7913 = vmatprep.subr.mxu0 %v8471_v63  ;;  %v10071_v25 = vld [vmem:[#allocation26_spill] sm:$0xff] }
 0x5c1   :  { %7994 = vmatprep.subr.mxu1 %v8246_v32  ;;  %7914 = vmatpush3.msra.mxu0 %v8471_v63 }
 0x5c2   :  { %7995 = vmatpush3.msra.mxu1 %v8246_v32  ;;  %7915 = vmatprep.subr.mxu0 %v8487_v22  ;;  %v10073_v32 = vld [vmem:[#allocation30_spill] sm:$0xff] }
 0x5c3   :  { %7996 = vmatprep.subr.mxu1 %v8254_v36  ;;  %7916 = vmatpush3.msra.mxu0 %v8487_v22 }
 0x5c4   :  { %7997 = vmatpush3.msra.mxu1 %v8254_v36  ;;  %7918 = vmatmul.mubr.f32.vlgmr.msra.gmra.mxu0 %v9561_v5  ;;  %v10075_v36 = vld [vmem:[#allocation36_spill] sm:$0xff] }
 0x5c5   :  { %7955 = vmatprep.subr.mxu0 %v8258_v38  ;;  %7998 = vmatprep.subr.mxu1 %v8263_v40 }
 0x5c6   :  { %7956 = vmatpush3.msra.mxu0 %v8258_v38  ;;  %7987 = vmatprep.mubr.f32.mxu0 %v9563_v56  ;;  %v10076_v38 = vld [vmem:[#allocation38_spill] sm:$0xff] }
 0x5c7   :  { %7999 = vmatpush3.msra.mxu1 %v8263_v40  ;;  %7957 = vmatprep.subr.mxu0 %v8268_v42  ;;  %v10078_v40 = vld [vmem:[#allocation42_spill] sm:$0xff] }
 0x5c8   :  { %8000 = vmatprep.subr.mxu1 %v8273_v44  ;;  %7958 = vmatpush3.msra.mxu0 %v8268_v42  ;;  %v10079_v42 = vld [vmem:[#allocation44_spill] sm:$0xff] }
 0x5c9   :  { %8001 = vmatpush3.msra.mxu1 %v8273_v44  ;;  %7959 = vmatprep.subr.mxu0 %v8282_v47  ;;  %v10081_v44 = vld [vmem:[#allocation48_spill] sm:$0xff] }
 0x5ca   :  { %8002 = vmatprep.subr.mxu1 %v8287_v49  ;;  %7960 = vmatpush3.msra.mxu0 %v8282_v47 }
 0x5cb   :  { %8003 = vmatpush3.msra.mxu1 %v8287_v49  ;;  %7961 = vmatprep.subr.mxu0 %v8294_v51 }
 0x5cc   :  { %8004 = vmatprep.subr.mxu1 %v8299_v53  ;;  %7962 = vmatpush3.msra.mxu0 %v8294_v51 }
 0x5cd   :  { %8005 = vmatpush3.msra.mxu1 %v8299_v53  ;;  %7963 = vmatprep.subr.mxu0 %v10070_v19 }
 0x5ce   :  { %8006 = vmatprep.subr.mxu1 %v8388_v14  ;;  %7964 = vmatpush3.msra.mxu0 %v10070_v19 }
 0x5cf   :  { %8007 = vmatpush3.msra.mxu1 %v8388_v14  ;;  %7965 = vmatprep.subr.mxu0 %v10071_v25 }
 0x5d0   :  { %8008 = vmatprep.subr.mxu1 %v8393_v20  ;;  %7966 = vmatpush3.msra.mxu0 %v10071_v25 }
 0x5d1   :  { %8009 = vmatpush3.msra.mxu1 %v8393_v20  ;;  %7967 = vmatprep.subr.mxu0 %v10072_v31 }
 0x5d2   :  { %8010 = vmatprep.subr.mxu1 %v8403_v26  ;;  %7968 = vmatpush3.msra.mxu0 %v10072_v31 }
 0x5d3   :  { %8011 = vmatpush3.msra.mxu1 %v8403_v26  ;;  %7969 = vmatprep.subr.mxu0 %v10073_v32 }
 0x5d4   :  { %8012 = vmatprep.subr.mxu1 %v8415_v37  ;;  %7970 = vmatpush3.msra.mxu0 %v10073_v32 }
 0x5d5   :  { %8013 = vmatpush3.msra.mxu1 %v8415_v37  ;;  %7971 = vmatprep.subr.mxu0 %v10074_v35 }
 0x5d6   :  { %8014 = vmatprep.subr.mxu1 %v8430_v59  ;;  %7972 = vmatpush3.msra.mxu0 %v10074_v35 }
 0x5d7   :  { %8015 = vmatpush3.msra.mxu1 %v8430_v59  ;;  %7973 = vmatprep.subr.mxu0 %v10075_v36 }
 0x5d8   :  { %8016 = vmatprep.subr.mxu1 %v8441_v12  ;;  %7974 = vmatpush3.msra.mxu0 %v10075_v36 }
 0x5d9   :  { %8017 = vmatpush3.msra.mxu1 %v8441_v12  ;;  %7975 = vmatprep.subr.mxu0 %v10076_v38 }
 0x5da   :  { %8018 = vmatprep.subr.mxu1 %v8456_v11  ;;  %7976 = vmatpush3.msra.mxu0 %v10076_v38 }
 0x5db   :  { %8019 = vmatpush3.msra.mxu1 %v8456_v11  ;;  %7977 = vmatprep.subr.mxu0 %v10077_v39 }
 0x5dc   :  { %8020 = vmatprep.subr.mxu1 %v8473_v6  ;;  %7978 = vmatpush3.msra.mxu0 %v10077_v39 }
 0x5dd   :  { %8021 = vmatpush3.msra.mxu1 %v8473_v6  ;;  %7979 = vmatprep.subr.mxu0 %v10078_v40 }
 0x5de   :  { %8023 = vmatmul.mubr.f32.vlgmr.msra.gmra.mxu1 %v9558_v3  ;;  %7980 = vmatpush3.msra.mxu0 %v10078_v40 }
 0x5df   :  { %7981 = vmatprep.subr.mxu0 %v10079_v42 }
 0x5e0   :  { %7982 = vmatpush3.msra.mxu0 %v10079_v42 }
 0x5e1   :  { %7983 = vmatprep.subr.mxu0 %v10080_v43 }
 0x5e2   :  { %7984 = vmatpush3.msra.mxu0 %v10080_v43 }
 0x5e3   :  { %7985 = vmatprep.subr.mxu0 %v10081_v44 }
 0x5e4   :  { %7986 = vmatpush3.msra.mxu0 %v10081_v44 }
 0x5e5   :  { %7988 = vmatmul.mubr.f32.vlgmr.msra.gmra.mxu0 %v9558_v3 }
 0x65b   :  { %v7884_v48 = vpop.f32.mrf.mxu1 }
 0x65d   :  { %v5602_v52 = vpop.f32.mrf.mxu1 }
 0x663   :  { %v7849_v47 = vpop.f32.mrf.mxu0 }
 0x664   :  { %v5609_v53 = vadd.f32 %v7884_v48, %v7849_v47 }
 0x665   :  { %v5441_v49 = vpop.f32.mrf.mxu0 }
 0x666   :  { %v5603_v6 = vadd.f32 %v5602_v52, %v5441_v49 }
 0x67c   :  { %v7954_v57 = vpop.f32.mrf.mxu1 }
 0x67e   :  { %v5808_v17 = vpop.f32.mrf.mxu1 }
 0x684   :  { %v7919_v51 = vpop.f32.mrf.mxu0 }
 0x685   :  { %v5720_v11 = vadd.f32 %v7919_v51, %v5609_v53 }
 0x686   :  { %v5712_v61 = vpop.f32.mrf.mxu0 }
 0x687   :  { %v5713_v14 = vadd.f32 %v5712_v61, %v5603_v6  ;;  %v5817_v20 = vadd.f32 %v7954_v57, %v5720_v11 }
 0x689   :  { %v5809_v37 = vadd.f32 %v5808_v17, %v5713_v14 }
 0x69e   :  { %v8024_v24 = vpop.f32.mrf.mxu1 }
 0x6a0   :  { %v6028_v16 = vpop.f32.mrf.mxu1 }
 0x6a5   :  { %v7989_v26 = vpop.f32.mrf.mxu0 }
 0x6a6   :  { %v5942_v34 = vadd.f32 %v7989_v26, %v5817_v20 }
 0x6a7   :  { %v5935_v55 = vpop.f32.mrf.mxu0 }
 0x6a8   :  { %v6035_v59 = vadd.f32 %v8024_v24, %v5942_v34  ;;  %v5936_v12 = vadd.f32 %v5935_v55, %v5809_v37 }
 0x6aa   :  { %v6053_v63 = vsub.f32 %v6035_v59, %v10082_v46  ;;  %v6029_v22 = vadd.f32 %v6028_v16, %v5936_v12 }
 0x6ac   :  { %v6061_v1 = vmul.f32 2.0, %v6053_v63  ;;  %v6052_v9 = vsub.f32 %v6029_v22, %v10083_v15 }
 0x6ae   :  { %v6063_v2 = vadd.f32 0.0009, %v6061_v1  ;;  %v6060_v29 = vmul.f32 2.0, %v6052_v9 }
 0x6b0   :  { %v6065_v60 = vmul.f32 %v6063_v2, %v6059_v50  ;;  %v6062_v21 = vadd.f32 0.0009, %v6060_v29 }
 0x6b2   :  { %v6079_v30 = vmul.f32 %v8033_v27, %v6065_v60  ;;  %v6064_v13 = vmul.f32 %v6062_v21, %v6058_v23 }
 0x6b4   :  { %v6077_v7 = vmul.f32 %v8035_v0, %v6064_v13 }
 0x6b6   :  { %v6080_v18 = vadd.f32 %v6079_v30, %v6077_v7 }
 0x6b8   :  { %v6081_v3 = vrot.slane %v6080_v18, 4 }
 0x6ba   :  { %v6082_v58 = vadd.f32 %v6081_v3, %v6080_v18 }
 0x6bc   :  { %v6083_v5 = vrot.slane %v6082_v58, 2 }
 0x6be   :  { %v6084_v56 = vadd.f32 %v6083_v5, %v6082_v58 }
 0x6c0   :  { %v6085_v62 = vrot.slane %v6084_v56, 1 }
 0x6c2   :  { %v6086_v54 = vadd.f32 %v6085_v62, %v6084_v56 }
 0x6c4   :  { %6087 = vst [vmem:[#allocation10] sm:$0x1] %v6086_v54 }
 0x6c5   :  { %8133 = shalt.err (!%p8130_p10)
}
 0x6c6   :  { %6097 = dma.vmem_to_hbm [thread:$0]  %s6095_s3, 16, %s9718_s4, [#allocation4]  }
 0x6c7   :  { %8148 = dma.done.wait [#allocation4], 16  }
 0x6c8   :  { %8149 = vsyncadd [#allocation4], 4294967280 }
 0x6c9   :  { %6101 = vsyncpa [#allocation3], 1 }
 0x6ca   :  { %6102 = vsyncpa [#allocation6], 1 }
 0x6cb   :  { %6103 = vsyncpa [#allocation9], 1 }
 0x6cc   :  { %6104 = vsyncpa [#allocation4], 1 }

</bundles_post_ra>
